<compile_context>
chip_gen: v6e
topology: v6e:2x2x1
jax: 0.10.0
libtpu: 0.0.40
codegen_flags: <defaults>
</compile_context>

<pallas_src>
import functools

import numpy as np

import jax
import jax.numpy as jnp
from jax.experimental import pallas as pl
from jax.experimental.pallas import tpu as pltpu


# ----------------------------------------------------------------------------
# Fused Pallas kernel: transposed matmul (MXU) + bias + [instance norm] + act
# ----------------------------------------------------------------------------
def _fused_convT_kernel(col_ref, w_ref, b_ref, o_ref, *, norm, act, eps=1e-5):
    # col_ref: (1, K, S) bf16   -- S = Ho*Wo of one batch item (lane-dense)
    # w_ref:   (N, K)    bf16   -- N = Cout (pre-transposed at init)
    # b_ref:   (N, 1)    f32
    # o_ref:   (1, N, S) bf16
    acc = jnp.dot(w_ref[...], col_ref[0], preferred_element_type=jnp.float32)
    acc = acc + b_ref[...]
    if norm:
        # InstanceNorm2d (affine=False, biased var, eps=1e-5): per-(batch, channel)
        # statistics == per-row statistics over the lane dim of this block.
        # Two-pass (centered) variance kept for numerical safety; temps are tiny
        # now that the layout is lane-dense.
        s = acc.shape[1]
        mean = jnp.sum(acc, axis=1, keepdims=True) * (1.0 / s)
        d = acc - mean
        var = jnp.sum(d * d, axis=1, keepdims=True) * (1.0 / s)
        acc = d * jax.lax.rsqrt(var + eps)
    if act == "relu":
        acc = jnp.maximum(acc, 0.0)
    elif act == "tanh":
        acc = jnp.tanh(acc)
    elif act == "sigmoid":
        acc = jax.nn.sigmoid(acc)
    o_ref[0] = acc.astype(o_ref.dtype)


def fused_matmul_T(colT, wT, bias, *, norm, act, out_dtype=jnp.bfloat16):
    """colT: (G, K, S) bf16, wT: (N, K) bf16, bias: (N, 1) f32.

    Returns (G, N, S) out_dtype = act(instance_norm(wT @ colT[g] + bias)) with the
    norm taken per (g, n) row (i.e. per batch-item, per channel)."""
    G, K, S = colT.shape
    N, Kw = wT.shape
    assert K == Kw
    kernel = functools.partial(_fused_convT_kernel, norm=norm, act=act)
    return pl.pallas_call(
        kernel,
        out_shape=jax.ShapeDtypeStruct((G, N, S), out_dtype),
        grid_spec=pltpu.PrefetchScalarGridSpec(
            num_scalar_prefetch=0,
            grid=(G,),
            in_specs=[
                # full-extent (K, S) / (N, K) blocks: legal without (8,128) padding
                pl.BlockSpec((1, K, S), lambda g: (g, 0, 0)),
                pl.BlockSpec((N, K), lambda g: (0, 0)),
                pl.BlockSpec((N, 1), lambda g: (0, 0)),
            ],
            out_specs=pl.BlockSpec((1, N, S), lambda g: (g, 0, 0)),
        ),
        # batch axis parallel -> both v7x TensorCores get a grid step; blocks are
        # KB-scale here so default scoped VMEM is ample (no vmem_limit_bytes needed).
        compiler_params=pltpu.CompilerParams(
            dimension_semantics=("parallel",)),
    )(colT, wT, bias)


# ----------------------------------------------------------------------------
# Convolution = static gather-index im2col (reflect pad / stride / 2x upsample
# all folded into the index table) + fused transposed Pallas kernel.
# Internal activation layout: NCHW, bf16.
# ----------------------------------------------------------------------------
@functools.lru_cache(maxsize=None)
def _gather_indices(H, W, kh, kw, stride, pad, upsample):
    """Flat spatial indices idx[kh*kw, Ho*Wo] into the (H*W) grid of the stored
    activation, implementing reflect padding, stride, and optional 2x nearest
    upsample of the *input* before the conv."""
    if upsample:
        Hu, Wu = 2 * H, 2 * W
    else:
        Hu, Wu = H, W
    Hp, Wp = Hu + 2 * pad, Wu + 2 * pad
    Ho = (Hp - kh) // stride + 1
    Wo = (Wp - kw) // stride + 1

    def _reflect(c, n):           # PyTorch ReflectionPad2d semantics (no edge repeat)
        c = np.abs(c)
        return np.where(c > n - 1, 2 * (n - 1) - c, c)

    oy = (np.arange(Ho) * stride)[:, None]
    ox = (np.arange(Wo) * stride)[None, :]
    idx = np.empty((kh * kw, Ho * Wo), np.int32)
    for i in range(kh):
        for j in range(kw):
            yy = _reflect(oy + i - pad, Hu)
            xx = _reflect(ox + j - pad, Wu)
            if upsample:          # nearest-neighbour: upsampled coord -> source coord
                yy = yy // 2
                xx = xx // 2
            idx[i * kw + j] = (yy * W + xx).reshape(-1).astype(np.int32)
    return idx, Ho, Wo


def conv2d_fused(x, layer, *, stride, pad, norm, act, upsample=False):
    """x: (B, Cin, H, W) bf16 NCHW. layer: {'wT': (Cout, Cin*k*k) bf16, 'b': (Cout,1) f32, 'k': k}.

    Returns (B, Cout, Ho, Wo) bf16 with bias + optional instance-norm + activation
    fused into the Pallas matmul epilogue."""
    B, Cin, H, W = x.shape
    k = layer["k"]
    wT, bias = layer["wT"], layer["b"]
    Cout = wT.shape[0]

    idx_np, Ho, Wo = _gather_indices(H, W, k, k, stride, pad, upsample)
    idx = jnp.asarray(idx_np)

    xf = x.reshape(B, Cin, H * W)
    # TODO(synk): this gather-im2col stays in XLA; at real image sizes move the tap
    # extraction into the kernel to avoid the kh*kw HBM amplification.
    col = jnp.take(xf, idx, axis=2)                      # (B, Cin, k*k, Ho*Wo) bf16
    col = col.reshape(B, Cin * k * k, Ho * Wo)           # K ordering = (cin, i, j)

    out = fused_matmul_T(col, wT, bias, norm=norm, act=act)   # (B, Cout, Ho*Wo) bf16
    return out.reshape(B, Cout, Ho, Wo)


def res_block(x, la, lb):
    y = conv2d_fused(x, la, stride=1, pad=1, norm=True, act="relu")
    y = conv2d_fused(y, lb, stride=1, pad=1, norm=True, act="none")
    return x + y


# ----------------------------------------------------------------------------
# StylelessGen (MUNIT-style content encoder / decoder, dim=8, 1 downsample, 1 res)
# ----------------------------------------------------------------------------
def _init_conv(key, cout, cin, k):
    w = 0.02 * jax.random.normal(key, (cout, cin, k, k), jnp.float32)
    # Pre-transpose / pre-cast once at init: (Cout, K) bf16, K ordered (cin, i, j).
    return {"wT": w.reshape(cout, cin * k * k).astype(jnp.bfloat16),
            "b": jnp.zeros((cout, 1), jnp.float32),
            "k": k}


def gen_init(key, in_dim, out_dim, dim=8):
    ks = jax.random.split(key, 8)
    return {
        "enc_c0": _init_conv(ks[0], dim, in_dim, 7),
        "enc_d0": _init_conv(ks[1], 2 * dim, dim, 4),
        "enc_r0a": _init_conv(ks[2], 2 * dim, 2 * dim, 3),
        "enc_r0b": _init_conv(ks[3], 2 * dim, 2 * dim, 3),
        "dec_r0a": _init_conv(ks[4], 2 * dim, 2 * dim, 3),
        "dec_r0b": _init_conv(ks[5], 2 * dim, 2 * dim, 3),
        "dec_u0": _init_conv(ks[6], dim, 2 * dim, 5),
        "dec_out": _init_conv(ks[7], out_dim, dim, 7),
    }


def gen_encode(p, x):
    y = conv2d_fused(x, p["enc_c0"], stride=1, pad=3, norm=True, act="relu")
    y = conv2d_fused(y, p["enc_d0"], stride=2, pad=1, norm=True, act="relu")
    y = res_block(y, p["enc_r0a"], p["enc_r0b"])
    return y


def gen_decode(p, c):
    y = res_block(c, p["dec_r0a"], p["dec_r0b"])
    # 2x nearest upsample folded into the conv's gather indices (no materialized repeat).
    y = conv2d_fused(y, p["dec_u0"], stride=1, pad=2, norm=True, act="relu", upsample=True)
    y = conv2d_fused(y, p["dec_out"], stride=1, pad=3, norm=False, act="tanh")
    return y


# ----------------------------------------------------------------------------
# Learnable Fourier texture pack + scene reader + projector (NCHW internal)
# ----------------------------------------------------------------------------
def texture_pack_init(key, num_tex, th, tw, num_freq=8, scale=10.0):
    k1, k2 = jax.random.split(key)
    W = 0.1 * jax.random.normal(k2, (2 * num_freq, 3 * num_tex), jnp.float32)
    return {
        "B": scale * jax.random.normal(k1, (2, num_freq), jnp.float32),
        "Wt": W.T.astype(jnp.bfloat16),                 # (3K, 2F), pre-transposed
        "b": jnp.zeros((3 * num_tex, 1), jnp.float32),
        "th": th, "tw": tw, "K": num_tex,
    }


def texture_pack_forward(tp):
    th, tw, K = tp["th"], tp["tw"], tp["K"]
    yy, xx = jnp.meshgrid(jnp.arange(th), jnp.arange(tw), indexing="ij")
    u = (xx + 0.5) / tw
    v = (yy + 0.5) / th
    uv = jnp.stack([u, v], axis=-1).reshape(th * tw, 2).astype(jnp.float32)
    ang = (uv @ tp["B"]) * (2.0 * jnp.pi)
    feats = jnp.concatenate([jnp.sin(ang), jnp.cos(ang)], axis=-1)      # (th*tw, 2F)
    featsT = feats.T[None].astype(jnp.bfloat16)                         # (1, 2F, th*tw)
    # Fourier-feature MLP head: same fused transposed Pallas kernel (sigmoid epilogue).
    colorsT = fused_matmul_T(featsT, tp["Wt"], tp["b"], norm=False, act="sigmoid")
    colorsT = colorsT[0].astype(jnp.float32)                            # (3K, th*tw)
    return colorsT.reshape(K, 3, th * tw)                               # (K, 3, th*tw)


def project_texture_pack(params, x_a, label_values,
                         tex_multiplier=1.0, hint_multiplier=1.0):
    # x_a NCHW: channel 0 = u, channel 1 = v (in [0,1]), channel 2 = label value.
    u, v, lv = x_a[:, 0], x_a[:, 1], x_a[:, 2]
    label_values = jnp.asarray(label_values, jnp.float32)
    labels = jnp.argmin(jnp.abs(lv[..., None] - label_values), axis=-1)  # (B, H, W)

    tex = texture_pack_forward(params["tex"])            # (K, 3, th*tw), in [0, 1]
    tex = (tex - 0.5) * 2.0 * tex_multiplier

    th, tw = params["tex"]["th"], params["tex"]["tw"]
    K = tex.shape[0]
    xi = jnp.clip(jnp.floor(u * tw).astype(jnp.int32), 0, tw - 1)
    yi = jnp.clip(jnp.floor(v * th).astype(jnp.int32), 0, th - 1)
    # TODO(synk): nearest-neighbour gather in place of the original bilinear grid_sample.
    tex_flat = tex.transpose(0, 2, 1).reshape(K * th * tw, 3)
    flat_idx = labels * (th * tw) + yi * tw + xi
    proj = jnp.take(tex_flat, flat_idx, axis=0)          # (B, H, W, 3)
    proj = proj.transpose(0, 3, 1, 2)                    # (B, 3, H, W)

    x_a = x_a * 2.0 - 1.0
    hint = x_a + 0.0
    x_a = hint * hint_multiplier + proj
    x_a = jnp.concatenate([x_a, hint], axis=1)           # (B, 6, H, W)
    return x_a, (u, v), labels


# ----------------------------------------------------------------------------
# MUNIT_Trainer.forward  (NCHW end-to-end; bf16 activations inside the generators)
# ----------------------------------------------------------------------------
def munit_forward(params, x_a, x_b, label_values):
    x_a_proj, _, _ = project_texture_pack(params, x_a, label_values)
    x_a_proj = x_a_proj.astype(jnp.bfloat16)
    x_b = x_b.astype(jnp.bfloat16)
    c_a = gen_encode(params["gen_a"], x_a_proj)
    c_b = gen_encode(params["gen_b"], x_b)
    x_ba = gen_decode(params["gen_a"], c_b)
    x_ab = gen_decode(params["gen_b"], c_a)
    return x_ab.astype(jnp.float32), x_ba.astype(jnp.float32)


def init_all(key):
    ka, kb, kt = jax.random.split(key, 3)
    return {
        "gen_a": gen_init(ka, in_dim=6, out_dim=6, dim=8),   # input_dim_a = 6 (proj+hint)
        "gen_b": gen_init(kb, in_dim=3, out_dim=3, dim=8),   # input_dim_b = 3
        "tex": texture_pack_init(kt, num_tex=4, th=16, tw=16, num_freq=8, scale=4.0),
    }


if __name__ == "__main__":
    key = jax.random.PRNGKey(0)
    B, H, W = 2, 16, 16
    label_values = jnp.asarray([0.0, 1.0 / 3.0, 2.0 / 3.0, 1.0], jnp.float32)

    k1, k2, k3, k4, k5 = jax.random.split(key, 5)
    u = jax.random.uniform(k1, (B, 1, H, W), jnp.float32)
    v = jax.random.uniform(k2, (B, 1, H, W), jnp.float32)
    lbl_idx = jax.random.randint(k3, (B, 1, H, W), 0, 4)
    lv = label_values[lbl_idx]
    x_a = jnp.concatenate([u, v, lv], axis=1)                        # (2, 3, 16, 16)
    x_b = jax.random.uniform(k4, (B, 3, H, W), jnp.float32, -1.0, 1.0)

    params = init_all(k5)

    fwd = jax.jit(lambda xa, xb: munit_forward(params, xa, xb, label_values))
    x_ab, x_ba = fwd(x_a, x_b)
    jax.block_until_ready((x_ab, x_ba))

    assert x_ab.shape == (B, 3, H, W), x_ab.shape
    assert x_ba.shape == (B, 6, H, W), x_ba.shape
    assert jnp.all(jnp.isfinite(x_ab)) and jnp.all(jnp.isfinite(x_ba))
    print("KERNEL_OK")
</pallas_src>

<mosaic_0001>
module attributes {stable_mosaic.version = 11 : i64} {
  func.func @_fused_convT_kernel(%arg0: i32, %arg1: memref<1x16x256xbf16, #tpu.memory_space<vmem>>, %arg2: memref<12x16xbf16, #tpu.memory_space<vmem>>, %arg3: memref<12x1xf32, #tpu.memory_space<vmem>>, %arg4: memref<1x12x256xbf16, #tpu.memory_space<vmem>>) attributes {dimension_semantics = [#tpu.dimension_semantics<parallel>], iteration_bounds = array<i64: 1>, scalar_prefetch = 0 : i64, scratch_operands = 0 : i64, tpu.core_type = #tpu.core_type<tc>, window_params = [{transform_indices = @transform_0, window_bounds = array<i64: 1, 16, 256>}, {pipeline_mode = #tpu.pipeline_mode<synchronous>, transform_indices = @transform_1, window_bounds = array<i64: 12, 16>}, {pipeline_mode = #tpu.pipeline_mode<synchronous>, transform_indices = @transform_2, window_bounds = array<i64: 12, 1>}, {transform_indices = @transform_3, window_bounds = array<i64: 1, 12, 256>}]} {
    %c0 = arith.constant 0 : index
    %c0_0 = arith.constant 0 : index
    %0 = vector.load %arg2[%c0, %c0_0] : memref<12x16xbf16, #tpu.memory_space<vmem>>, vector<12x16xbf16>
    %c0_1 = arith.constant 0 : index
    %c0_2 = arith.constant 0 : index
    %c0_3 = arith.constant 0 : index
    %1 = vector.load %arg1[%c0_1, %c0_2, %c0_3] : memref<1x16x256xbf16, #tpu.memory_space<vmem>>, vector<1x16x256xbf16>
    %2 = vector.shape_cast %1 : vector<1x16x256xbf16> to vector<16x256xbf16>
    %cst = arith.constant dense<0.000000e+00> : vector<12x256xf32>
    %3 = tpu.matmul %0, %2, %cst {dimension_numbers = #tpu.dot_dimension_numbers<[1], [0], [0], [1], [0, 0, 1, 1], [], []>} : vector<12x16xbf16>, vector<16x256xbf16>, vector<12x256xf32> -> vector<12x256xf32>
    %c0_4 = arith.constant 0 : index
    %c0_5 = arith.constant 0 : index
    %4 = vector.load %arg3[%c0_4, %c0_5] : memref<12x1xf32, #tpu.memory_space<vmem>>, vector<12x1xf32>
    %5 = vector.broadcast %4 : vector<12x1xf32> to vector<12x256xf32>
    %6 = arith.addf %3, %5 : vector<12x256xf32>
    %7 = arith.negf %6 : vector<12x256xf32>
    %8 = math.exp %7 : vector<12x256xf32>
    %cst_6 = arith.constant 1.000000e+00 : f32
    %9 = vector.broadcast %cst_6 : f32 to vector<12x256xf32>
    %10 = arith.addf %9, %8 : vector<12x256xf32>
    %11 = arith.divf %9, %10 : vector<12x256xf32>
    %12 = arith.truncf %11 : vector<12x256xf32> to vector<12x256xbf16>
    %c0_7 = arith.constant 0 : index
    %c0_8 = arith.constant 0 : index
    %c0_9 = arith.constant 0 : index
    %13 = vector.load %arg4[%c0_7, %c0_8, %c0_9] : memref<1x12x256xbf16, #tpu.memory_space<vmem>>, vector<1x12x256xbf16>
    %14 = vector.shape_cast %13 : vector<1x12x256xbf16> to vector<12x256xbf16>
    %15 = vector.shape_cast %12 : vector<12x256xbf16> to vector<1x12x256xbf16>
    tpu.vector_store %arg4[%c0_7, %c0_8, %c0_9], %15 {strides = array<i32>} : memref<1x12x256xbf16, #tpu.memory_space<vmem>>, vector<1x12x256xbf16>,
    return
  }
  func.func @transform_0(%arg0: i32) -> (i32, i32, i32) {
    %c0_i32 = arith.constant 0 : i32
    %c0_i32_0 = arith.constant 0 : i32
    %c0_i32_1 = arith.constant 0 : i32
    return %arg0, %c0_i32, %c0_i32_0 : i32, i32, i32
  }
  func.func @transform_1(%arg0: i32) -> (i32, i32) {
    %c0_i32 = arith.constant 0 : i32
    %c0_i32_0 = arith.constant 0 : i32
    %c0_i32_1 = arith.constant 0 : i32
    return %c0_i32, %c0_i32_0 : i32, i32
  }
  func.func @transform_2(%arg0: i32) -> (i32, i32) {
    %c0_i32 = arith.constant 0 : i32
    %c0_i32_0 = arith.constant 0 : i32
    %c0_i32_1 = arith.constant 0 : i32
    return %c0_i32, %c0_i32_0 : i32, i32
  }
  func.func @transform_3(%arg0: i32) -> (i32, i32, i32) {
    %c0_i32 = arith.constant 0 : i32
    %c0_i32_0 = arith.constant 0 : i32
    %c0_i32_1 = arith.constant 0 : i32
    return %arg0, %c0_i32, %c0_i32_0 : i32, i32, i32
  }
}

module attributes {stable_mosaic.version = 11 : i64} {
  func.func @_fused_convT_kernel(%arg0: i32, %arg1: memref<1x294x256xbf16, #tpu.memory_space<vmem>>, %arg2: memref<8x294xbf16, #tpu.memory_space<vmem>>, %arg3: memref<8x1xf32, #tpu.memory_space<vmem>>, %arg4: memref<1x8x256xbf16, #tpu.memory_space<vmem>>) attributes {dimension_semantics = [#tpu.dimension_semantics<parallel>], iteration_bounds = array<i64: 2>, scalar_prefetch = 0 : i64, scratch_operands = 0 : i64, tpu.core_type = #tpu.core_type<tc>, window_params = [{transform_indices = @transform_0, window_bounds = array<i64: 1, 294, 256>}, {pipeline_mode = #tpu.pipeline_mode<synchronous>, transform_indices = @transform_1, window_bounds = array<i64: 8, 294>}, {pipeline_mode = #tpu.pipeline_mode<synchronous>, transform_indices = @transform_2, window_bounds = array<i64: 8, 1>}, {transform_indices = @transform_3, window_bounds = array<i64: 1, 8, 256>}]} {
    %c0 = arith.constant 0 : index
    %c0_0 = arith.constant 0 : index
    %0 = vector.load %arg2[%c0, %c0_0] : memref<8x294xbf16, #tpu.memory_space<vmem>>, vector<8x294xbf16>
    %c0_1 = arith.constant 0 : index
    %c0_2 = arith.constant 0 : index
    %c0_3 = arith.constant 0 : index
    %1 = vector.load %arg1[%c0_1, %c0_2, %c0_3] : memref<1x294x256xbf16, #tpu.memory_space<vmem>>, vector<1x294x256xbf16>
    %2 = vector.shape_cast %1 : vector<1x294x256xbf16> to vector<294x256xbf16>
    %cst = arith.constant dense<0.000000e+00> : vector<8x256xf32>
    %3 = tpu.matmul %0, %2, %cst {dimension_numbers = #tpu.dot_dimension_numbers<[1], [0], [0], [1], [0, 0, 1, 1], [], []>} : vector<8x294xbf16>, vector<294x256xbf16>, vector<8x256xf32> -> vector<8x256xf32>
    %c0_4 = arith.constant 0 : index
    %c0_5 = arith.constant 0 : index
    %4 = vector.load %arg3[%c0_4, %c0_5] : memref<8x1xf32, #tpu.memory_space<vmem>>, vector<8x1xf32>
    %5 = vector.broadcast %4 : vector<8x1xf32> to vector<8x256xf32>
    %6 = arith.addf %3, %5 : vector<8x256xf32>
    %cst_6 = arith.constant dense<0.000000e+00> : vector<8xf32>
    %7 = vector.multi_reduction <add>, %6, %cst_6 [1] : vector<8x256xf32> to vector<8xf32>
    %8 = vector.shape_cast %7 : vector<8xf32> to vector<8x1xf32>
    %cst_7 = arith.constant 3.906250e-03 : f32
    %9 = vector.broadcast %cst_7 : f32 to vector<8x1xf32>
    %10 = arith.mulf %8, %9 : vector<8x1xf32>
    %11 = vector.broadcast %10 : vector<8x1xf32> to vector<8x256xf32>
    %12 = arith.subf %6, %11 : vector<8x256xf32>
    %13 = arith.mulf %12, %12 : vector<8x256xf32>
    %cst_8 = arith.constant dense<0.000000e+00> : vector<8xf32>
    %14 = vector.multi_reduction <add>, %13, %cst_8 [1] : vector<8x256xf32> to vector<8xf32>
    %15 = vector.shape_cast %14 : vector<8xf32> to vector<8x1xf32>
    %cst_9 = arith.constant 3.906250e-03 : f32
    %16 = vector.broadcast %cst_9 : f32 to vector<8x1xf32>
    %17 = arith.mulf %15, %16 : vector<8x1xf32>
    %cst_10 = arith.constant 9.99999974E-6 : f32
    %18 = vector.broadcast %cst_10 : f32 to vector<8x1xf32>
    %19 = arith.addf %17, %18 : vector<8x1xf32>
    %20 = math.rsqrt %19 : vector<8x1xf32>
    %21 = vector.broadcast %20 : vector<8x1xf32> to vector<8x256xf32>
    %22 = arith.mulf %12, %21 : vector<8x256xf32>
    %cst_11 = arith.constant 0.000000e+00 : f32
    %23 = vector.broadcast %cst_11 : f32 to vector<8x256xf32>
    %24 = arith.maximumf %22, %23 : vector<8x256xf32>
    %25 = arith.truncf %24 : vector<8x256xf32> to vector<8x256xbf16>
    %c0_12 = arith.constant 0 : index
    %c0_13 = arith.constant 0 : index
    %c0_14 = arith.constant 0 : index
    %26 = vector.load %arg4[%c0_12, %c0_13, %c0_14] : memref<1x8x256xbf16, #tpu.memory_space<vmem>>, vector<1x8x256xbf16>
    %27 = vector.shape_cast %26 : vector<1x8x256xbf16> to vector<8x256xbf16>
    %28 = vector.shape_cast %25 : vector<8x256xbf16> to vector<1x8x256xbf16>
    tpu.vector_store %arg4[%c0_12, %c0_13, %c0_14], %28 {strides = array<i32>} : memref<1x8x256xbf16, #tpu.memory_space<vmem>>, vector<1x8x256xbf16>,
    return
  }
  func.func @transform_0(%arg0: i32) -> (i32, i32, i32) {
    %c0_i32 = arith.constant 0 : i32
    %c0_i32_0 = arith.constant 0 : i32
    %c0_i32_1 = arith.constant 0 : i32
    return %arg0, %c0_i32, %c0_i32_0 : i32, i32, i32
  }
  func.func @transform_1(%arg0: i32) -> (i32, i32) {
    %c0_i32 = arith.constant 0 : i32
    %c0_i32_0 = arith.constant 0 : i32
    %c0_i32_1 = arith.constant 0 : i32
    return %c0_i32, %c0_i32_0 : i32, i32
  }
  func.func @transform_2(%arg0: i32) -> (i32, i32) {
    %c0_i32 = arith.constant 0 : i32
    %c0_i32_0 = arith.constant 0 : i32
    %c0_i32_1 = arith.constant 0 : i32
    return %c0_i32, %c0_i32_0 : i32, i32
  }
  func.func @transform_3(%arg0: i32) -> (i32, i32, i32) {
    %c0_i32 = arith.constant 0 : i32
    %c0_i32_0 = arith.constant 0 : i32
    %c0_i32_1 = arith.constant 0 : i32
    return %arg0, %c0_i32, %c0_i32_0 : i32, i32, i32
  }
}

module attributes {stable_mosaic.version = 11 : i64} {
  func.func @_fused_convT_kernel(%arg0: i32, %arg1: memref<1x128x64xbf16, #tpu.memory_space<vmem>>, %arg2: memref<16x128xbf16, #tpu.memory_space<vmem>>, %arg3: memref<16x1xf32, #tpu.memory_space<vmem>>, %arg4: memref<1x16x64xbf16, #tpu.memory_space<vmem>>) attributes {dimension_semantics = [#tpu.dimension_semantics<parallel>], iteration_bounds = array<i64: 2>, scalar_prefetch = 0 : i64, scratch_operands = 0 : i64, tpu.core_type = #tpu.core_type<tc>, window_params = [{transform_indices = @transform_0, window_bounds = array<i64: 1, 128, 64>}, {pipeline_mode = #tpu.pipeline_mode<synchronous>, transform_indices = @transform_1, window_bounds = array<i64: 16, 128>}, {pipeline_mode = #tpu.pipeline_mode<synchronous>, transform_indices = @transform_2, window_bounds = array<i64: 16, 1>}, {transform_indices = @transform_3, window_bounds = array<i64: 1, 16, 64>}]} {
    %c0 = arith.constant 0 : index
    %c0_0 = arith.constant 0 : index
    %0 = vector.load %arg2[%c0, %c0_0] : memref<16x128xbf16, #tpu.memory_space<vmem>>, vector<16x128xbf16>
    %c0_1 = arith.constant 0 : index
    %c0_2 = arith.constant 0 : index
    %c0_3 = arith.constant 0 : index
    %1 = vector.load %arg1[%c0_1, %c0_2, %c0_3] : memref<1x128x64xbf16, #tpu.memory_space<vmem>>, vector<1x128x64xbf16>
    %2 = vector.shape_cast %1 : vector<1x128x64xbf16> to vector<128x64xbf16>
    %cst = arith.constant dense<0.000000e+00> : vector<16x64xf32>
    %3 = tpu.matmul %0, %2, %cst {dimension_numbers = #tpu.dot_dimension_numbers<[1], [0], [0], [1], [0, 0, 1, 1], [], []>} : vector<16x128xbf16>, vector<128x64xbf16>, vector<16x64xf32> -> vector<16x64xf32>
    %c0_4 = arith.constant 0 : index
    %c0_5 = arith.constant 0 : index
    %4 = vector.load %arg3[%c0_4, %c0_5] : memref<16x1xf32, #tpu.memory_space<vmem>>, vector<16x1xf32>
    %5 = vector.broadcast %4 : vector<16x1xf32> to vector<16x64xf32>
    %6 = arith.addf %3, %5 : vector<16x64xf32>
    %cst_6 = arith.constant dense<0.000000e+00> : vector<16xf32>
    %7 = vector.multi_reduction <add>, %6, %cst_6 [1] : vector<16x64xf32> to vector<16xf32>
    %8 = vector.shape_cast %7 : vector<16xf32> to vector<16x1xf32>
    %cst_7 = arith.constant 1.562500e-02 : f32
    %9 = vector.broadcast %cst_7 : f32 to vector<16x1xf32>
    %10 = arith.mulf %8, %9 : vector<16x1xf32>
    %11 = vector.broadcast %10 : vector<16x1xf32> to vector<16x64xf32>
    %12 = arith.subf %6, %11 : vector<16x64xf32>
    %13 = arith.mulf %12, %12 : vector<16x64xf32>
    %cst_8 = arith.constant dense<0.000000e+00> : vector<16xf32>
    %14 = vector.multi_reduction <add>, %13, %cst_8 [1] : vector<16x64xf32> to vector<16xf32>
    %15 = vector.shape_cast %14 : vector<16xf32> to vector<16x1xf32>
    %cst_9 = arith.constant 1.562500e-02 : f32
    %16 = vector.broadcast %cst_9 : f32 to vector<16x1xf32>
    %17 = arith.mulf %15, %16 : vector<16x1xf32>
    %cst_10 = arith.constant 9.99999974E-6 : f32
    %18 = vector.broadcast %cst_10 : f32 to vector<16x1xf32>
    %19 = arith.addf %17, %18 : vector<16x1xf32>
    %20 = math.rsqrt %19 : vector<16x1xf32>
    %21 = vector.broadcast %20 : vector<16x1xf32> to vector<16x64xf32>
    %22 = arith.mulf %12, %21 : vector<16x64xf32>
    %cst_11 = arith.constant 0.000000e+00 : f32
    %23 = vector.broadcast %cst_11 : f32 to vector<16x64xf32>
    %24 = arith.maximumf %22, %23 : vector<16x64xf32>
    %25 = arith.truncf %24 : vector<16x64xf32> to vector<16x64xbf16>
    %c0_12 = arith.constant 0 : index
    %c0_13 = arith.constant 0 : index
    %c0_14 = arith.constant 0 : index
    %26 = vector.load %arg4[%c0_12, %c0_13, %c0_14] : memref<1x16x64xbf16, #tpu.memory_space<vmem>>, vector<1x16x64xbf16>
    %27 = vector.shape_cast %26 : vector<1x16x64xbf16> to vector<16x64xbf16>
    %28 = vector.shape_cast %25 : vector<16x64xbf16> to vector<1x16x64xbf16>
    tpu.vector_store %arg4[%c0_12, %c0_13, %c0_14], %28 {strides = array<i32>} : memref<1x16x64xbf16, #tpu.memory_space<vmem>>, vector<1x16x64xbf16>,
    return
  }
  func.func @transform_0(%arg0: i32) -> (i32, i32, i32) {
    %c0_i32 = arith.constant 0 : i32
    %c0_i32_0 = arith.constant 0 : i32
    %c0_i32_1 = arith.constant 0 : i32
    return %arg0, %c0_i32, %c0_i32_0 : i32, i32, i32
  }
  func.func @transform_1(%arg0: i32) -> (i32, i32) {
    %c0_i32 = arith.constant 0 : i32
    %c0_i32_0 = arith.constant 0 : i32
    %c0_i32_1 = arith.constant 0 : i32
    return %c0_i32, %c0_i32_0 : i32, i32
  }
  func.func @transform_2(%arg0: i32) -> (i32, i32) {
    %c0_i32 = arith.constant 0 : i32
    %c0_i32_0 = arith.constant 0 : i32
    %c0_i32_1 = arith.constant 0 : i32
    return %c0_i32, %c0_i32_0 : i32, i32
  }
  func.func @transform_3(%arg0: i32) -> (i32, i32, i32) {
    %c0_i32 = arith.constant 0 : i32
    %c0_i32_0 = arith.constant 0 : i32
    %c0_i32_1 = arith.constant 0 : i32
    return %arg0, %c0_i32, %c0_i32_0 : i32, i32, i32
  }
}

module attributes {stable_mosaic.version = 11 : i64} {
  func.func @_fused_convT_kernel(%arg0: i32, %arg1: memref<1x144x64xbf16, #tpu.memory_space<vmem>>, %arg2: memref<16x144xbf16, #tpu.memory_space<vmem>>, %arg3: memref<16x1xf32, #tpu.memory_space<vmem>>, %arg4: memref<1x16x64xbf16, #tpu.memory_space<vmem>>) attributes {dimension_semantics = [#tpu.dimension_semantics<parallel>], iteration_bounds = array<i64: 2>, scalar_prefetch = 0 : i64, scratch_operands = 0 : i64, tpu.core_type = #tpu.core_type<tc>, window_params = [{transform_indices = @transform_0, window_bounds = array<i64: 1, 144, 64>}, {pipeline_mode = #tpu.pipeline_mode<synchronous>, transform_indices = @transform_1, window_bounds = array<i64: 16, 144>}, {pipeline_mode = #tpu.pipeline_mode<synchronous>, transform_indices = @transform_2, window_bounds = array<i64: 16, 1>}, {transform_indices = @transform_3, window_bounds = array<i64: 1, 16, 64>}]} {
    %c0 = arith.constant 0 : index
    %c0_0 = arith.constant 0 : index
    %0 = vector.load %arg2[%c0, %c0_0] : memref<16x144xbf16, #tpu.memory_space<vmem>>, vector<16x144xbf16>
    %c0_1 = arith.constant 0 : index
    %c0_2 = arith.constant 0 : index
    %c0_3 = arith.constant 0 : index
    %1 = vector.load %arg1[%c0_1, %c0_2, %c0_3] : memref<1x144x64xbf16, #tpu.memory_space<vmem>>, vector<1x144x64xbf16>
    %2 = vector.shape_cast %1 : vector<1x144x64xbf16> to vector<144x64xbf16>
    %cst = arith.constant dense<0.000000e+00> : vector<16x64xf32>
    %3 = tpu.matmul %0, %2, %cst {dimension_numbers = #tpu.dot_dimension_numbers<[1], [0], [0], [1], [0, 0, 1, 1], [], []>} : vector<16x144xbf16>, vector<144x64xbf16>, vector<16x64xf32> -> vector<16x64xf32>
    %c0_4 = arith.constant 0 : index
    %c0_5 = arith.constant 0 : index
    %4 = vector.load %arg3[%c0_4, %c0_5] : memref<16x1xf32, #tpu.memory_space<vmem>>, vector<16x1xf32>
    %5 = vector.broadcast %4 : vector<16x1xf32> to vector<16x64xf32>
    %6 = arith.addf %3, %5 : vector<16x64xf32>
    %cst_6 = arith.constant dense<0.000000e+00> : vector<16xf32>
    %7 = vector.multi_reduction <add>, %6, %cst_6 [1] : vector<16x64xf32> to vector<16xf32>
    %8 = vector.shape_cast %7 : vector<16xf32> to vector<16x1xf32>
    %cst_7 = arith.constant 1.562500e-02 : f32
    %9 = vector.broadcast %cst_7 : f32 to vector<16x1xf32>
    %10 = arith.mulf %8, %9 : vector<16x1xf32>
    %11 = vector.broadcast %10 : vector<16x1xf32> to vector<16x64xf32>
    %12 = arith.subf %6, %11 : vector<16x64xf32>
    %13 = arith.mulf %12, %12 : vector<16x64xf32>
    %cst_8 = arith.constant dense<0.000000e+00> : vector<16xf32>
    %14 = vector.multi_reduction <add>, %13, %cst_8 [1] : vector<16x64xf32> to vector<16xf32>
    %15 = vector.shape_cast %14 : vector<16xf32> to vector<16x1xf32>
    %cst_9 = arith.constant 1.562500e-02 : f32
    %16 = vector.broadcast %cst_9 : f32 to vector<16x1xf32>
    %17 = arith.mulf %15, %16 : vector<16x1xf32>
    %cst_10 = arith.constant 9.99999974E-6 : f32
    %18 = vector.broadcast %cst_10 : f32 to vector<16x1xf32>
    %19 = arith.addf %17, %18 : vector<16x1xf32>
    %20 = math.rsqrt %19 : vector<16x1xf32>
    %21 = vector.broadcast %20 : vector<16x1xf32> to vector<16x64xf32>
    %22 = arith.mulf %12, %21 : vector<16x64xf32>
    %23 = arith.truncf %22 : vector<16x64xf32> to vector<16x64xbf16>
    %c0_11 = arith.constant 0 : index
    %c0_12 = arith.constant 0 : index
    %c0_13 = arith.constant 0 : index
    %24 = vector.load %arg4[%c0_11, %c0_12, %c0_13] : memref<1x16x64xbf16, #tpu.memory_space<vmem>>, vector<1x16x64xbf16>
    %25 = vector.shape_cast %24 : vector<1x16x64xbf16> to vector<16x64xbf16>
    %26 = vector.shape_cast %23 : vector<16x64xbf16> to vector<1x16x64xbf16>
    tpu.vector_store %arg4[%c0_11, %c0_12, %c0_13], %26 {strides = array<i32>} : memref<1x16x64xbf16, #tpu.memory_space<vmem>>, vector<1x16x64xbf16>,
    return
  }
  func.func @transform_0(%arg0: i32) -> (i32, i32, i32) {
    %c0_i32 = arith.constant 0 : i32
    %c0_i32_0 = arith.constant 0 : i32
    %c0_i32_1 = arith.constant 0 : i32
    return %arg0, %c0_i32, %c0_i32_0 : i32, i32, i32
  }
  func.func @transform_1(%arg0: i32) -> (i32, i32) {
    %c0_i32 = arith.constant 0 : i32
    %c0_i32_0 = arith.constant 0 : i32
    %c0_i32_1 = arith.constant 0 : i32
    return %c0_i32, %c0_i32_0 : i32, i32
  }
  func.func @transform_2(%arg0: i32) -> (i32, i32) {
    %c0_i32 = arith.constant 0 : i32
    %c0_i32_0 = arith.constant 0 : i32
    %c0_i32_1 = arith.constant 0 : i32
    return %c0_i32, %c0_i32_0 : i32, i32
  }
  func.func @transform_3(%arg0: i32) -> (i32, i32, i32) {
    %c0_i32 = arith.constant 0 : i32
    %c0_i32_0 = arith.constant 0 : i32
    %c0_i32_1 = arith.constant 0 : i32
    return %arg0, %c0_i32, %c0_i32_0 : i32, i32, i32
  }
}

module attributes {stable_mosaic.version = 11 : i64} {
  func.func @_fused_convT_kernel(%arg0: i32, %arg1: memref<1x144x64xbf16, #tpu.memory_space<vmem>>, %arg2: memref<16x144xbf16, #tpu.memory_space<vmem>>, %arg3: memref<16x1xf32, #tpu.memory_space<vmem>>, %arg4: memref<1x16x64xbf16, #tpu.memory_space<vmem>>) attributes {dimension_semantics = [#tpu.dimension_semantics<parallel>], iteration_bounds = array<i64: 2>, scalar_prefetch = 0 : i64, scratch_operands = 0 : i64, tpu.core_type = #tpu.core_type<tc>, window_params = [{transform_indices = @transform_0, window_bounds = array<i64: 1, 144, 64>}, {pipeline_mode = #tpu.pipeline_mode<synchronous>, transform_indices = @transform_1, window_bounds = array<i64: 16, 144>}, {pipeline_mode = #tpu.pipeline_mode<synchronous>, transform_indices = @transform_2, window_bounds = array<i64: 16, 1>}, {transform_indices = @transform_3, window_bounds = array<i64: 1, 16, 64>}]} {
    %c0 = arith.constant 0 : index
    %c0_0 = arith.constant 0 : index
    %0 = vector.load %arg2[%c0, %c0_0] : memref<16x144xbf16, #tpu.memory_space<vmem>>, vector<16x144xbf16>
    %c0_1 = arith.constant 0 : index
    %c0_2 = arith.constant 0 : index
    %c0_3 = arith.constant 0 : index
    %1 = vector.load %arg1[%c0_1, %c0_2, %c0_3] : memref<1x144x64xbf16, #tpu.memory_space<vmem>>, vector<1x144x64xbf16>
    %2 = vector.shape_cast %1 : vector<1x144x64xbf16> to vector<144x64xbf16>
    %cst = arith.constant dense<0.000000e+00> : vector<16x64xf32>
    %3 = tpu.matmul %0, %2, %cst {dimension_numbers = #tpu.dot_dimension_numbers<[1], [0], [0], [1], [0, 0, 1, 1], [], []>} : vector<16x144xbf16>, vector<144x64xbf16>, vector<16x64xf32> -> vector<16x64xf32>
    %c0_4 = arith.constant 0 : index
    %c0_5 = arith.constant 0 : index
    %4 = vector.load %arg3[%c0_4, %c0_5] : memref<16x1xf32, #tpu.memory_space<vmem>>, vector<16x1xf32>
    %5 = vector.broadcast %4 : vector<16x1xf32> to vector<16x64xf32>
    %6 = arith.addf %3, %5 : vector<16x64xf32>
    %cst_6 = arith.constant dense<0.000000e+00> : vector<16xf32>
    %7 = vector.multi_reduction <add>, %6, %cst_6 [1] : vector<16x64xf32> to vector<16xf32>
    %8 = vector.shape_cast %7 : vector<16xf32> to vector<16x1xf32>
    %cst_7 = arith.constant 1.562500e-02 : f32
    %9 = vector.broadcast %cst_7 : f32 to vector<16x1xf32>
    %10 = arith.mulf %8, %9 : vector<16x1xf32>
    %11 = vector.broadcast %10 : vector<16x1xf32> to vector<16x64xf32>
    %12 = arith.subf %6, %11 : vector<16x64xf32>
    %13 = arith.mulf %12, %12 : vector<16x64xf32>
    %cst_8 = arith.constant dense<0.000000e+00> : vector<16xf32>
    %14 = vector.multi_reduction <add>, %13, %cst_8 [1] : vector<16x64xf32> to vector<16xf32>
    %15 = vector.shape_cast %14 : vector<16xf32> to vector<16x1xf32>
    %cst_9 = arith.constant 1.562500e-02 : f32
    %16 = vector.broadcast %cst_9 : f32 to vector<16x1xf32>
    %17 = arith.mulf %15, %16 : vector<16x1xf32>
    %cst_10 = arith.constant 9.99999974E-6 : f32
    %18 = vector.broadcast %cst_10 : f32 to vector<16x1xf32>
    %19 = arith.addf %17, %18 : vector<16x1xf32>
    %20 = math.rsqrt %19 : vector<16x1xf32>
    %21 = vector.broadcast %20 : vector<16x1xf32> to vector<16x64xf32>
    %22 = arith.mulf %12, %21 : vector<16x64xf32>
    %cst_11 = arith.constant 0.000000e+00 : f32
    %23 = vector.broadcast %cst_11 : f32 to vector<16x64xf32>
    %24 = arith.maximumf %22, %23 : vector<16x64xf32>
    %25 = arith.truncf %24 : vector<16x64xf32> to vector<16x64xbf16>
    %c0_12 = arith.constant 0 : index
    %c0_13 = arith.constant 0 : index
    %c0_14 = arith.constant 0 : index
    %26 = vector.load %arg4[%c0_12, %c0_13, %c0_14] : memref<1x16x64xbf16, #tpu.memory_space<vmem>>, vector<1x16x64xbf16>
    %27 = vector.shape_cast %26 : vector<1x16x64xbf16> to vector<16x64xbf16>
    %28 = vector.shape_cast %25 : vector<16x64xbf16> to vector<1x16x64xbf16>
    tpu.vector_store %arg4[%c0_12, %c0_13, %c0_14], %28 {strides = array<i32>} : memref<1x16x64xbf16, #tpu.memory_space<vmem>>, vector<1x16x64xbf16>,
    return
  }
  func.func @transform_0(%arg0: i32) -> (i32, i32, i32) {
    %c0_i32 = arith.constant 0 : i32
    %c0_i32_0 = arith.constant 0 : i32
    %c0_i32_1 = arith.constant 0 : i32
    return %arg0, %c0_i32, %c0_i32_0 : i32, i32, i32
  }
  func.func @transform_1(%arg0: i32) -> (i32, i32) {
    %c0_i32 = arith.constant 0 : i32
    %c0_i32_0 = arith.constant 0 : i32
    %c0_i32_1 = arith.constant 0 : i32
    return %c0_i32, %c0_i32_0 : i32, i32
  }
  func.func @transform_2(%arg0: i32) -> (i32, i32) {
    %c0_i32 = arith.constant 0 : i32
    %c0_i32_0 = arith.constant 0 : i32
    %c0_i32_1 = arith.constant 0 : i32
    return %c0_i32, %c0_i32_0 : i32, i32
  }
  func.func @transform_3(%arg0: i32) -> (i32, i32, i32) {
    %c0_i32 = arith.constant 0 : i32
    %c0_i32_0 = arith.constant 0 : i32
    %c0_i32_1 = arith.constant 0 : i32
    return %arg0, %c0_i32, %c0_i32_0 : i32, i32, i32
  }
}

module attributes {stable_mosaic.version = 11 : i64} {
  func.func @_fused_convT_kernel(%arg0: i32, %arg1: memref<1x400x256xbf16, #tpu.memory_space<vmem>>, %arg2: memref<8x400xbf16, #tpu.memory_space<vmem>>, %arg3: memref<8x1xf32, #tpu.memory_space<vmem>>, %arg4: memref<1x8x256xbf16, #tpu.memory_space<vmem>>) attributes {dimension_semantics = [#tpu.dimension_semantics<parallel>], iteration_bounds = array<i64: 2>, scalar_prefetch = 0 : i64, scratch_operands = 0 : i64, tpu.core_type = #tpu.core_type<tc>, window_params = [{transform_indices = @transform_0, window_bounds = array<i64: 1, 400, 256>}, {pipeline_mode = #tpu.pipeline_mode<synchronous>, transform_indices = @transform_1, window_bounds = array<i64: 8, 400>}, {pipeline_mode = #tpu.pipeline_mode<synchronous>, transform_indices = @transform_2, window_bounds = array<i64: 8, 1>}, {transform_indices = @transform_3, window_bounds = array<i64: 1, 8, 256>}]} {
    %c0 = arith.constant 0 : index
    %c0_0 = arith.constant 0 : index
    %0 = vector.load %arg2[%c0, %c0_0] : memref<8x400xbf16, #tpu.memory_space<vmem>>, vector<8x400xbf16>
    %c0_1 = arith.constant 0 : index
    %c0_2 = arith.constant 0 : index
    %c0_3 = arith.constant 0 : index
    %1 = vector.load %arg1[%c0_1, %c0_2, %c0_3] : memref<1x400x256xbf16, #tpu.memory_space<vmem>>, vector<1x400x256xbf16>
    %2 = vector.shape_cast %1 : vector<1x400x256xbf16> to vector<400x256xbf16>
    %cst = arith.constant dense<0.000000e+00> : vector<8x256xf32>
    %3 = tpu.matmul %0, %2, %cst {dimension_numbers = #tpu.dot_dimension_numbers<[1], [0], [0], [1], [0, 0, 1, 1], [], []>} : vector<8x400xbf16>, vector<400x256xbf16>, vector<8x256xf32> -> vector<8x256xf32>
    %c0_4 = arith.constant 0 : index
    %c0_5 = arith.constant 0 : index
    %4 = vector.load %arg3[%c0_4, %c0_5] : memref<8x1xf32, #tpu.memory_space<vmem>>, vector<8x1xf32>
    %5 = vector.broadcast %4 : vector<8x1xf32> to vector<8x256xf32>
    %6 = arith.addf %3, %5 : vector<8x256xf32>
    %cst_6 = arith.constant dense<0.000000e+00> : vector<8xf32>
    %7 = vector.multi_reduction <add>, %6, %cst_6 [1] : vector<8x256xf32> to vector<8xf32>
    %8 = vector.shape_cast %7 : vector<8xf32> to vector<8x1xf32>
    %cst_7 = arith.constant 3.906250e-03 : f32
    %9 = vector.broadcast %cst_7 : f32 to vector<8x1xf32>
    %10 = arith.mulf %8, %9 : vector<8x1xf32>
    %11 = vector.broadcast %10 : vector<8x1xf32> to vector<8x256xf32>
    %12 = arith.subf %6, %11 : vector<8x256xf32>
    %13 = arith.mulf %12, %12 : vector<8x256xf32>
    %cst_8 = arith.constant dense<0.000000e+00> : vector<8xf32>
    %14 = vector.multi_reduction <add>, %13, %cst_8 [1] : vector<8x256xf32> to vector<8xf32>
    %15 = vector.shape_cast %14 : vector<8xf32> to vector<8x1xf32>
    %cst_9 = arith.constant 3.906250e-03 : f32
    %16 = vector.broadcast %cst_9 : f32 to vector<8x1xf32>
    %17 = arith.mulf %15, %16 : vector<8x1xf32>
    %cst_10 = arith.constant 9.99999974E-6 : f32
    %18 = vector.broadcast %cst_10 : f32 to vector<8x1xf32>
    %19 = arith.addf %17, %18 : vector<8x1xf32>
    %20 = math.rsqrt %19 : vector<8x1xf32>
    %21 = vector.broadcast %20 : vector<8x1xf32> to vector<8x256xf32>
    %22 = arith.mulf %12, %21 : vector<8x256xf32>
    %cst_11 = arith.constant 0.000000e+00 : f32
    %23 = vector.broadcast %cst_11 : f32 to vector<8x256xf32>
    %24 = arith.maximumf %22, %23 : vector<8x256xf32>
    %25 = arith.truncf %24 : vector<8x256xf32> to vector<8x256xbf16>
    %c0_12 = arith.constant 0 : index
    %c0_13 = arith.constant 0 : index
    %c0_14 = arith.constant 0 : index
    %26 = vector.load %arg4[%c0_12, %c0_13, %c0_14] : memref<1x8x256xbf16, #tpu.memory_space<vmem>>, vector<1x8x256xbf16>
    %27 = vector.shape_cast %26 : vector<1x8x256xbf16> to vector<8x256xbf16>
    %28 = vector.shape_cast %25 : vector<8x256xbf16> to vector<1x8x256xbf16>
    tpu.vector_store %arg4[%c0_12, %c0_13, %c0_14], %28 {strides = array<i32>} : memref<1x8x256xbf16, #tpu.memory_space<vmem>>, vector<1x8x256xbf16>,
    return
  }
  func.func @transform_0(%arg0: i32) -> (i32, i32, i32) {
    %c0_i32 = arith.constant 0 : i32
    %c0_i32_0 = arith.constant 0 : i32
    %c0_i32_1 = arith.constant 0 : i32
    return %arg0, %c0_i32, %c0_i32_0 : i32, i32, i32
  }
  func.func @transform_1(%arg0: i32) -> (i32, i32) {
    %c0_i32 = arith.constant 0 : i32
    %c0_i32_0 = arith.constant 0 : i32
    %c0_i32_1 = arith.constant 0 : i32
    return %c0_i32, %c0_i32_0 : i32, i32
  }
  func.func @transform_2(%arg0: i32) -> (i32, i32) {
    %c0_i32 = arith.constant 0 : i32
    %c0_i32_0 = arith.constant 0 : i32
    %c0_i32_1 = arith.constant 0 : i32
    return %c0_i32, %c0_i32_0 : i32, i32
  }
  func.func @transform_3(%arg0: i32) -> (i32, i32, i32) {
    %c0_i32 = arith.constant 0 : i32
    %c0_i32_0 = arith.constant 0 : i32
    %c0_i32_1 = arith.constant 0 : i32
    return %arg0, %c0_i32, %c0_i32_0 : i32, i32, i32
  }
}

module attributes {stable_mosaic.version = 11 : i64} {
  func.func @_fused_convT_kernel(%arg0: i32, %arg1: memref<1x392x256xbf16, #tpu.memory_space<vmem>>, %arg2: memref<3x392xbf16, #tpu.memory_space<vmem>>, %arg3: memref<3x1xf32, #tpu.memory_space<vmem>>, %arg4: memref<1x3x256xbf16, #tpu.memory_space<vmem>>) attributes {dimension_semantics = [#tpu.dimension_semantics<parallel>], iteration_bounds = array<i64: 2>, scalar_prefetch = 0 : i64, scratch_operands = 0 : i64, tpu.core_type = #tpu.core_type<tc>, window_params = [{transform_indices = @transform_0, window_bounds = array<i64: 1, 392, 256>}, {pipeline_mode = #tpu.pipeline_mode<synchronous>, transform_indices = @transform_1, window_bounds = array<i64: 3, 392>}, {pipeline_mode = #tpu.pipeline_mode<synchronous>, transform_indices = @transform_2, window_bounds = array<i64: 3, 1>}, {transform_indices = @transform_3, window_bounds = array<i64: 1, 3, 256>}]} {
    %c0 = arith.constant 0 : index
    %c0_0 = arith.constant 0 : index
    %0 = vector.load %arg2[%c0, %c0_0] : memref<3x392xbf16, #tpu.memory_space<vmem>>, vector<3x392xbf16>
    %c0_1 = arith.constant 0 : index
    %c0_2 = arith.constant 0 : index
    %c0_3 = arith.constant 0 : index
    %1 = vector.load %arg1[%c0_1, %c0_2, %c0_3] : memref<1x392x256xbf16, #tpu.memory_space<vmem>>, vector<1x392x256xbf16>
    %2 = vector.shape_cast %1 : vector<1x392x256xbf16> to vector<392x256xbf16>
    %cst = arith.constant dense<0.000000e+00> : vector<3x256xf32>
    %3 = tpu.matmul %0, %2, %cst {dimension_numbers = #tpu.dot_dimension_numbers<[1], [0], [0], [1], [0, 0, 1, 1], [], []>} : vector<3x392xbf16>, vector<392x256xbf16>, vector<3x256xf32> -> vector<3x256xf32>
    %c0_4 = arith.constant 0 : index
    %c0_5 = arith.constant 0 : index
    %4 = vector.load %arg3[%c0_4, %c0_5] : memref<3x1xf32, #tpu.memory_space<vmem>>, vector<3x1xf32>
    %5 = vector.broadcast %4 : vector<3x1xf32> to vector<3x256xf32>
    %6 = arith.addf %3, %5 : vector<3x256xf32>
    %7 = math.tanh %6 : vector<3x256xf32>
    %8 = arith.truncf %7 : vector<3x256xf32> to vector<3x256xbf16>
    %c0_6 = arith.constant 0 : index
    %c0_7 = arith.constant 0 : index
    %c0_8 = arith.constant 0 : index
    %9 = vector.load %arg4[%c0_6, %c0_7, %c0_8] : memref<1x3x256xbf16, #tpu.memory_space<vmem>>, vector<1x3x256xbf16>
    %10 = vector.shape_cast %9 : vector<1x3x256xbf16> to vector<3x256xbf16>
    %11 = vector.shape_cast %8 : vector<3x256xbf16> to vector<1x3x256xbf16>
    tpu.vector_store %arg4[%c0_6, %c0_7, %c0_8], %11 {strides = array<i32>} : memref<1x3x256xbf16, #tpu.memory_space<vmem>>, vector<1x3x256xbf16>,
    return
  }
  func.func @transform_0(%arg0: i32) -> (i32, i32, i32) {
    %c0_i32 = arith.constant 0 : i32
    %c0_i32_0 = arith.constant 0 : i32
    %c0_i32_1 = arith.constant 0 : i32
    return %arg0, %c0_i32, %c0_i32_0 : i32, i32, i32
  }
  func.func @transform_1(%arg0: i32) -> (i32, i32) {
    %c0_i32 = arith.constant 0 : i32
    %c0_i32_0 = arith.constant 0 : i32
    %c0_i32_1 = arith.constant 0 : i32
    return %c0_i32, %c0_i32_0 : i32, i32
  }
  func.func @transform_2(%arg0: i32) -> (i32, i32) {
    %c0_i32 = arith.constant 0 : i32
    %c0_i32_0 = arith.constant 0 : i32
    %c0_i32_1 = arith.constant 0 : i32
    return %c0_i32, %c0_i32_0 : i32, i32
  }
  func.func @transform_3(%arg0: i32) -> (i32, i32, i32) {
    %c0_i32 = arith.constant 0 : i32
    %c0_i32_0 = arith.constant 0 : i32
    %c0_i32_1 = arith.constant 0 : i32
    return %arg0, %c0_i32, %c0_i32_0 : i32, i32, i32
  }
}

module attributes {stable_mosaic.version = 11 : i64} {
  func.func @_fused_convT_kernel(%arg0: i32, %arg1: memref<1x392x256xbf16, #tpu.memory_space<vmem>>, %arg2: memref<6x392xbf16, #tpu.memory_space<vmem>>, %arg3: memref<6x1xf32, #tpu.memory_space<vmem>>, %arg4: memref<1x6x256xbf16, #tpu.memory_space<vmem>>) attributes {dimension_semantics = [#tpu.dimension_semantics<parallel>], iteration_bounds = array<i64: 2>, scalar_prefetch = 0 : i64, scratch_operands = 0 : i64, tpu.core_type = #tpu.core_type<tc>, window_params = [{transform_indices = @transform_0, window_bounds = array<i64: 1, 392, 256>}, {pipeline_mode = #tpu.pipeline_mode<synchronous>, transform_indices = @transform_1, window_bounds = array<i64: 6, 392>}, {pipeline_mode = #tpu.pipeline_mode<synchronous>, transform_indices = @transform_2, window_bounds = array<i64: 6, 1>}, {transform_indices = @transform_3, window_bounds = array<i64: 1, 6, 256>}]} {
    %c0 = arith.constant 0 : index
    %c0_0 = arith.constant 0 : index
    %0 = vector.load %arg2[%c0, %c0_0] : memref<6x392xbf16, #tpu.memory_space<vmem>>, vector<6x392xbf16>
    %c0_1 = arith.constant 0 : index
    %c0_2 = arith.constant 0 : index
    %c0_3 = arith.constant 0 : index
    %1 = vector.load %arg1[%c0_1, %c0_2, %c0_3] : memref<1x392x256xbf16, #tpu.memory_space<vmem>>, vector<1x392x256xbf16>
    %2 = vector.shape_cast %1 : vector<1x392x256xbf16> to vector<392x256xbf16>
    %cst = arith.constant dense<0.000000e+00> : vector<6x256xf32>
    %3 = tpu.matmul %0, %2, %cst {dimension_numbers = #tpu.dot_dimension_numbers<[1], [0], [0], [1], [0, 0, 1, 1], [], []>} : vector<6x392xbf16>, vector<392x256xbf16>, vector<6x256xf32> -> vector<6x256xf32>
    %c0_4 = arith.constant 0 : index
    %c0_5 = arith.constant 0 : index
    %4 = vector.load %arg3[%c0_4, %c0_5] : memref<6x1xf32, #tpu.memory_space<vmem>>, vector<6x1xf32>
    %5 = vector.broadcast %4 : vector<6x1xf32> to vector<6x256xf32>
    %6 = arith.addf %3, %5 : vector<6x256xf32>
    %7 = math.tanh %6 : vector<6x256xf32>
    %8 = arith.truncf %7 : vector<6x256xf32> to vector<6x256xbf16>
    %c0_6 = arith.constant 0 : index
    %c0_7 = arith.constant 0 : index
    %c0_8 = arith.constant 0 : index
    %9 = vector.load %arg4[%c0_6, %c0_7, %c0_8] : memref<1x6x256xbf16, #tpu.memory_space<vmem>>, vector<1x6x256xbf16>
    %10 = vector.shape_cast %9 : vector<1x6x256xbf16> to vector<6x256xbf16>
    %11 = vector.shape_cast %8 : vector<6x256xbf16> to vector<1x6x256xbf16>
    tpu.vector_store %arg4[%c0_6, %c0_7, %c0_8], %11 {strides = array<i32>} : memref<1x6x256xbf16, #tpu.memory_space<vmem>>, vector<1x6x256xbf16>,
    return
  }
  func.func @transform_0(%arg0: i32) -> (i32, i32, i32) {
    %c0_i32 = arith.constant 0 : i32
    %c0_i32_0 = arith.constant 0 : i32
    %c0_i32_1 = arith.constant 0 : i32
    return %arg0, %c0_i32, %c0_i32_0 : i32, i32, i32
  }
  func.func @transform_1(%arg0: i32) -> (i32, i32) {
    %c0_i32 = arith.constant 0 : i32
    %c0_i32_0 = arith.constant 0 : i32
    %c0_i32_1 = arith.constant 0 : i32
    return %c0_i32, %c0_i32_0 : i32, i32
  }
  func.func @transform_2(%arg0: i32) -> (i32, i32) {
    %c0_i32 = arith.constant 0 : i32
    %c0_i32_0 = arith.constant 0 : i32
    %c0_i32_1 = arith.constant 0 : i32
    return %c0_i32, %c0_i32_0 : i32, i32
  }
  func.func @transform_3(%arg0: i32) -> (i32, i32, i32) {
    %c0_i32 = arith.constant 0 : i32
    %c0_i32_0 = arith.constant 0 : i32
    %c0_i32_1 = arith.constant 0 : i32
    return %arg0, %c0_i32, %c0_i32_0 : i32, i32, i32
  }
}

module attributes {stable_mosaic.version = 11 : i64} {
  func.func @_fused_convT_kernel(%arg0: i32, %arg1: memref<1x147x256xbf16, #tpu.memory_space<vmem>>, %arg2: memref<8x147xbf16, #tpu.memory_space<vmem>>, %arg3: memref<8x1xf32, #tpu.memory_space<vmem>>, %arg4: memref<1x8x256xbf16, #tpu.memory_space<vmem>>) attributes {dimension_semantics = [#tpu.dimension_semantics<parallel>], iteration_bounds = array<i64: 2>, scalar_prefetch = 0 : i64, scratch_operands = 0 : i64, tpu.core_type = #tpu.core_type<tc>, window_params = [{transform_indices = @transform_0, window_bounds = array<i64: 1, 147, 256>}, {pipeline_mode = #tpu.pipeline_mode<synchronous>, transform_indices = @transform_1, window_bounds = array<i64: 8, 147>}, {pipeline_mode = #tpu.pipeline_mode<synchronous>, transform_indices = @transform_2, window_bounds = array<i64: 8, 1>}, {transform_indices = @transform_3, window_bounds = array<i64: 1, 8, 256>}]} {
    %c0 = arith.constant 0 : index
    %c0_0 = arith.constant 0 : index
    %0 = vector.load %arg2[%c0, %c0_0] : memref<8x147xbf16, #tpu.memory_space<vmem>>, vector<8x147xbf16>
    %c0_1 = arith.constant 0 : index
    %c0_2 = arith.constant 0 : index
    %c0_3 = arith.constant 0 : index
    %1 = vector.load %arg1[%c0_1, %c0_2, %c0_3] : memref<1x147x256xbf16, #tpu.memory_space<vmem>>, vector<1x147x256xbf16>
    %2 = vector.shape_cast %1 : vector<1x147x256xbf16> to vector<147x256xbf16>
    %cst = arith.constant dense<0.000000e+00> : vector<8x256xf32>
    %3 = tpu.matmul %0, %2, %cst {dimension_numbers = #tpu.dot_dimension_numbers<[1], [0], [0], [1], [0, 0, 1, 1], [], []>} : vector<8x147xbf16>, vector<147x256xbf16>, vector<8x256xf32> -> vector<8x256xf32>
    %c0_4 = arith.constant 0 : index
    %c0_5 = arith.constant 0 : index
    %4 = vector.load %arg3[%c0_4, %c0_5] : memref<8x1xf32, #tpu.memory_space<vmem>>, vector<8x1xf32>
    %5 = vector.broadcast %4 : vector<8x1xf32> to vector<8x256xf32>
    %6 = arith.addf %3, %5 : vector<8x256xf32>
    %cst_6 = arith.constant dense<0.000000e+00> : vector<8xf32>
    %7 = vector.multi_reduction <add>, %6, %cst_6 [1] : vector<8x256xf32> to vector<8xf32>
    %8 = vector.shape_cast %7 : vector<8xf32> to vector<8x1xf32>
    %cst_7 = arith.constant 3.906250e-03 : f32
    %9 = vector.broadcast %cst_7 : f32 to vector<8x1xf32>
    %10 = arith.mulf %8, %9 : vector<8x1xf32>
    %11 = vector.broadcast %10 : vector<8x1xf32> to vector<8x256xf32>
    %12 = arith.subf %6, %11 : vector<8x256xf32>
    %13 = arith.mulf %12, %12 : vector<8x256xf32>
    %cst_8 = arith.constant dense<0.000000e+00> : vector<8xf32>
    %14 = vector.multi_reduction <add>, %13, %cst_8 [1] : vector<8x256xf32> to vector<8xf32>
    %15 = vector.shape_cast %14 : vector<8xf32> to vector<8x1xf32>
    %cst_9 = arith.constant 3.906250e-03 : f32
    %16 = vector.broadcast %cst_9 : f32 to vector<8x1xf32>
    %17 = arith.mulf %15, %16 : vector<8x1xf32>
    %cst_10 = arith.constant 9.99999974E-6 : f32
    %18 = vector.broadcast %cst_10 : f32 to vector<8x1xf32>
    %19 = arith.addf %17, %18 : vector<8x1xf32>
    %20 = math.rsqrt %19 : vector<8x1xf32>
    %21 = vector.broadcast %20 : vector<8x1xf32> to vector<8x256xf32>
    %22 = arith.mulf %12, %21 : vector<8x256xf32>
    %cst_11 = arith.constant 0.000000e+00 : f32
    %23 = vector.broadcast %cst_11 : f32 to vector<8x256xf32>
    %24 = arith.maximumf %22, %23 : vector<8x256xf32>
    %25 = arith.truncf %24 : vector<8x256xf32> to vector<8x256xbf16>
    %c0_12 = arith.constant 0 : index
    %c0_13 = arith.constant 0 : index
    %c0_14 = arith.constant 0 : index
    %26 = vector.load %arg4[%c0_12, %c0_13, %c0_14] : memref<1x8x256xbf16, #tpu.memory_space<vmem>>, vector<1x8x256xbf16>
    %27 = vector.shape_cast %26 : vector<1x8x256xbf16> to vector<8x256xbf16>
    %28 = vector.shape_cast %25 : vector<8x256xbf16> to vector<1x8x256xbf16>
    tpu.vector_store %arg4[%c0_12, %c0_13, %c0_14], %28 {strides = array<i32>} : memref<1x8x256xbf16, #tpu.memory_space<vmem>>, vector<1x8x256xbf16>,
    return
  }
  func.func @transform_0(%arg0: i32) -> (i32, i32, i32) {
    %c0_i32 = arith.constant 0 : i32
    %c0_i32_0 = arith.constant 0 : i32
    %c0_i32_1 = arith.constant 0 : i32
    return %arg0, %c0_i32, %c0_i32_0 : i32, i32, i32
  }
  func.func @transform_1(%arg0: i32) -> (i32, i32) {
    %c0_i32 = arith.constant 0 : i32
    %c0_i32_0 = arith.constant 0 : i32
    %c0_i32_1 = arith.constant 0 : i32
    return %c0_i32, %c0_i32_0 : i32, i32
  }
  func.func @transform_2(%arg0: i32) -> (i32, i32) {
    %c0_i32 = arith.constant 0 : i32
    %c0_i32_0 = arith.constant 0 : i32
    %c0_i32_1 = arith.constant 0 : i32
    return %c0_i32, %c0_i32_0 : i32, i32
  }
  func.func @transform_3(%arg0: i32) -> (i32, i32, i32) {
    %c0_i32 = arith.constant 0 : i32
    %c0_i32_0 = arith.constant 0 : i32
    %c0_i32_1 = arith.constant 0 : i32
    return %arg0, %c0_i32, %c0_i32_0 : i32, i32, i32
  }
}

</mosaic_0001>

<bundles_post_ra>
// kernel: _lambda_.17
= control target key start
LH: loop header
LB: loop body
LE: loop exit
PB: predicated region body
PF: predicated region fallthrough
CT: control target
= control target key end

     0   :  { %8 = vsyncpa [#allocation3], 0  ;;  %s209_s12 = smov [#allocation2]   ;;  %s254_s0 = inlined_call_operand.vmem [shape: bf16[1,16,256], index: 0, kind: input, shape index: {}]   ;;  %s255_s1 = inlined_call_operand.hbm [shape: bf16[12,16], index: 1, kind: input, shape index: {}]   ;;  %s256_s2 = inlined_call_operand.vmem [shape: f32[12,1], index: 2, kind: input, shape index: {}]   ;;  %s257_s3 = inlined_call_operand.vmem [shape: bf16[1,12,256], index: 3, kind: output, shape index: {}]  }
   0x1   :  { %s16_s13 = sshll.u32 %s209_s12, 4  ;;  %s17_s13 = int_to_ptr.vmem [resolvable:$true] %s16_s13 }
   0x2   :  { %s195_s14 = scalar_lea.vmem %s17_s13, 128  ;;  %p200_p1 = scmp.lt.s32.totalorder %s17_s13, %s17_s13 }
   0x3   :  { %p196_p0 = scmp.ne.s32.totalorder %s17_s13, %s195_s14  ;;  %p201_p2 = scmp.lt.s32.totalorder %s195_s14, %s195_s14 }
   0x5   :  { %p202_p3 = por %p201_p2, %p200_p1 }
   0x7   :  { %p203_p4 = pnand %p202_p3, %p196_p0 }
   0x9   :  { %206 = shalt.err (!%p203_p4)
}
   0xa   :  { %s210_s15 = smov 64   ;;  %s211_s16 = smov 4  }
   0xb   :  { %22 = dma.hbm_to_vmem [thread:$0]  %s255_s1, 128, %s17_s13, [#allocation3], %s210_s15, %s210_s15, %s211_s16  }
   0xc   :  { %207 = dma.done.wait [#allocation3], 128  }
   0xd   :  { %208 = vsyncadd [#allocation3], 4294967168  ;;  %v212_v0 = vmov 0   ;;  %v167_v1 = vld [vmem:[%s254_s0 + $0x4] ss:$8 sps:$4 sm:$0xff]   ;;  %vm60_vm0 = vcmask 130048  }
   0xe   :  { %96 = vmatprep.mubr.bf16.mxu0 %v212_v0  ;;  %166 = vset.pattern.permute.xlu0 %v212_v0  ;;  %v169_v2 = vld [vmem:[%s254_s0] ss:$8 sps:$4 sm:$0xff]  }
   0xf   :  { %78 = vmatprep.subr.bf16.mxu0 %v167_v1  ;;  %v170_v3 = vld [vmem:[#allocation2] sm:$0x3f]   ;;  %v34_v5 = vld [vmem:[%s256_s2 + $0x8] sm:$0xf] }
  0x10   :  { %v33_v4 = vld [vmem:[%s256_s2] sm:$0xff]  ;;  %79 = vmatpush1.bf16.msra.mxu0 %v169_v2 }
  0x11   :  { %37 = vperm.xlu0 %166, %v33_v4  }
  0x13   :  { %153 = vmatmul.mubr.msk.bf16.vlgmr.msra.gmra.mxu0 %vm60_vm0, %v170_v3 }
  0x15   :  { %42 = vperm.xlu0 %166, %v34_v5  }
  0x8c   :  { %v38_v6 = vpop.permute.xlu0 %37 }
  0x90   :  { %v43_v12 = vpop.permute.xlu0 %42 }
  0xd3   :  { %v98_v7 = vpop.f32.mrf.mxu0 }
  0xd4   :  { %v99_v8 = vadd.f32 %v98_v7, %v38_v6 }
  0xd5   :  { %v100_v9 = vpop.f32.mrf.mxu0 }
  0xd6   :  { %v154_v10 = vmul.f32 -1.442695, %v99_v8  ;;  %v101_v11 = vadd.f32 %v100_v9, %v38_v6 }
  0xd7   :  { %v102_v13 = vpop.f32.mrf.mxu0 }
  0xd8   :  { %171 = vpow2.f32 %v154_v10  ;;  %v155_v14 = vmul.f32 -1.442695, %v101_v11  ;;  %v103_v15 = vadd.f32 %v102_v13, %v43_v12 }
  0xd9   :  { %v104_v16 = vpop.f32.mrf.mxu0 }
  0xda   :  { %173 = vpow2.f32 %v155_v14  ;;  %v156_v17 = vmul.f32 -1.442695, %v103_v15  ;;  %v105_v18 = vadd.f32 %v104_v16, %v43_v12 }
  0xdc   :  { %175 = vpow2.f32 %v156_v17  ;;  %v157_v19 = vmul.f32 -1.442695, %v105_v18 }
  0xde   :  { %177 = vpow2.f32 %v157_v19 }
  0xe5   :  { %v172_v20 = vpop.eup %171 }
  0xe6   :  { %v119_v21 = vadd.f32 1.0, %v172_v20 }
  0xe7   :  { %v174_v22 = vpop.eup %173 }
  0xe8   :  { %v120_v23 = vadd.f32 1.0, %v174_v22  ;;  %179 = vrcp.f32 %v119_v21 }
  0xe9   :  { %v176_v24 = vpop.eup %175 }
  0xea   :  { %181 = vrcp.f32 %v120_v23  ;;  %v121_v25 = vadd.f32 1.0, %v176_v24 }
  0xeb   :  { %v178_v26 = vpop.eup %177 }
  0xec   :  { %v122_v27 = vadd.f32 1.0, %v178_v26  ;;  %183 = vrcp.f32 %v121_v25 }
  0xee   :  { %185 = vrcp.f32 %v122_v27 }
  0xf5   :  { %v180_v28 = vpop.eup %179 }
  0xf7   :  { %v182_v29 = vpop.eup %181 }
  0xf8   :  { %v160_v30 = vpack.c.bf16 %v182_v29, %v180_v28 }
  0xf9   :  { %v184_v31 = vpop.eup %183 }
  0xfa   :  { %143 = vst [vmem:[%s257_s3] sm:$0xff] %v160_v30 }
  0xfb   :  { %v186_v32 = vpop.eup %185 }
  0xfc   :  { %v161_v33 = vpack.c.bf16 %v186_v32, %v184_v31 }
  0xfe   :  { %144 = vst [vmem:[%s257_s3 + $0x8] sm:$0x33] %v161_v33 }
  0xff   :  { %149 = vsyncpa [#allocation3], 1 }

// kernel: _lambda_.18
= control target key start
LH: loop header
LB: loop body
LE: loop exit
PB: predicated region body
PF: predicated region fallthrough
CT: control target
= control target key end

     0   :  { %s744_s12 = smov 0   ;;  %s819_s0 = inlined_call_operand.vmem [shape: bf16[2,294,256], index: 0, kind: input, shape index: {}]   ;;  %s820_s1 = inlined_call_operand.vmem [shape: bf16[8,294], index: 1, kind: input, shape index: {}]   ;;  %s821_s2 = inlined_call_operand.vmem [shape: f32[8,1], index: 2, kind: input, shape index: {}]   ;;  %s822_s3 = inlined_call_operand.vmem [shape: bf16[2,8,256], index: 3, kind: output, shape index: {}]  }
   0x1 LB: > { %s587_s13 = sadd.s32 4294967295, %s721_s12   ;;  %p591_p0 = scmp.ge.s32.totalorder %s721_s12, 1  ;;  %s721_s12 = sphi %s744_s12, %s13_s12  }
   0x2   : > { %p137_p1 = scmp.lt.s32.totalorder %s721_s12, 3 }
   0x4   : > { %p138_p2 = pnand %p591_p0, %p137_p1 }
   0x5   : > { %p161_p3 = scmp.lt.s32.totalorder (!%p138_p2), %s587_s13, 1 }
   0x6   : > { %141 = sbr.rel (%p138_p2) target bundleno = 590 (0x24e), region = 32 }
   0xb   : > { %v723_v0 = vmov 0   ;;  %v755_v1 = vld [vmem:[%s820_s1] sm:$0xff]  ;;  %s824_s13 = smov (!%p161_p3, %s587_s13), 1  ;;  %vm416_vm0 = vcmask 1042432   ;;  %v709_v29 = vld [vmem:[%s820_s1 + $0x8] ss:$0 sps:$4 sm:$0xff]  }
   0xc   : > { %496 = vmatprep.mubr.bf16.mxu1 %v723_v0  ;;  %653 = vset.pattern.permute.xlu0 %v723_v0  ;;  %v211_v2 = vld [vmem:[%s821_s2] sm:$0xff]  ;;  %v596_v3 = vcombine.high %v755_v1, %v755_v1  ;;  %s643_s18 = smul.u32 296, %s824_s13  ;;  %vm412_vm1 = vcmask 310272   ;;  %v595_v45 = vcombine.low %v755_v1, %v755_v1  ;;  %s641_s24 = sshll.u32 %s824_s13, 3 }
   0xd   : > { %214 = vperm.xlu0 %653, %v211_v2   ;;  %s170_s27 = scalar_lea.vmem %s822_s3, %s641_s24 }
   0xe   : > { %455 = vmatprep.mubr.bf16.mxu0 %v596_v3  ;;  %s768_s21 = scalar_lea.vmem %s819_s0, %s643_s18 }
   0xf   : > { %v654_v4 = vld [vmem:[%s768_s21 + $0x74] ss:$8 sps:$4 sm:$0xff]   ;;  %v656_v5 = vld [vmem:[%s768_s21 + $0x70] ss:$8 sps:$4 sm:$0xff]   ;;  %v657_v6 = vld [vmem:[%s768_s21 + $0x64] ss:$8 sps:$4 sm:$0xff]  }
  0x10   : > { %423 = vmatprep.subr.bf16.mxu0 %v654_v4  ;;  %v659_v7 = vld [vmem:[%s768_s21 + $0x60] ss:$8 sps:$4 sm:$0xff]   ;;  %v660_v8 = vld [vmem:[%s768_s21 + $0x54] ss:$8 sps:$4 sm:$0xff]   ;;  %v662_v9 = vld [vmem:[%s768_s21 + $0x50] ss:$8 sps:$4 sm:$0xff]  }
  0x11   : > { %424 = vmatpush1.bf16.msra.mxu0 %v656_v5  ;;  %v663_v10 = vld [vmem:[%s768_s21 + $0x44] ss:$8 sps:$4 sm:$0xff]   ;;  %v665_v11 = vld [vmem:[%s768_s21 + $0x40] ss:$8 sps:$4 sm:$0xff]   ;;  %v666_v12 = vld [vmem:[%s768_s21 + $0x34] ss:$8 sps:$4 sm:$0xff]  }
  0x12   : > { %425 = vmatprep.subr.bf16.mxu0 %v657_v6  ;;  %v668_v13 = vld [vmem:[%s768_s21 + $0x30] ss:$8 sps:$4 sm:$0xff]   ;;  %v669_v14 = vld [vmem:[%s768_s21 + $0x24] ss:$8 sps:$4 sm:$0xff]   ;;  %v671_v18 = vld [vmem:[%s768_s21 + $0x20] ss:$8 sps:$4 sm:$0xff]  }
  0x13   : > { %v210_v15 = vld [vmem:[%s768_s21 + $0x120] sm:$0x77]  ;;  %v697_v19 = vld [vmem:[%s768_s21 + $0x114] ss:$8 sps:$4 sm:$0xff]   ;;  %v700_v22 = vld [vmem:[%s768_s21 + $0x110] ss:$8 sps:$4 sm:$0xff]  }
  0x14   : > { %v635_v16 = vcombine.high %v210_v15, %v210_v15  ;;  %v634_v17 = vcombine.low %v210_v15, %v210_v15  ;;  %v672_v20 = vld [vmem:[%s768_s21 + $0x14] ss:$8 sps:$4 sm:$0xff]   ;;  %v703_v23 = vld [vmem:[%s768_s21 + $0x104] ss:$8 sps:$4 sm:$0xff]   ;;  %v674_v24 = vld [vmem:[%s768_s21 + $0x10] ss:$8 sps:$4 sm:$0xff]  }
  0x15   : > { %426 = vmatpush1.bf16.msra.mxu0 %v659_v7  ;;  %v675_v25 = vld [vmem:[%s768_s21 + $0x4] ss:$8 sps:$4 sm:$0xff]   ;;  %v706_v26 = vld [vmem:[%s768_s21 + $0x100] ss:$8 sps:$4 sm:$0xff]   ;;  %v678_v28 = vld [vmem:[%s768_s21 + $0xf4] ss:$8 sps:$4 sm:$0xff]  }
  0x16   : > { %427 = vmatprep.subr.bf16.mxu0 %v660_v8  ;;  %636 = vmatprep.subr.msk.bf16.mxu1 %vm416_vm0, %v635_v16  ;;  %v418_v21 = vsel %vm416_vm0, %v634_v17, 0  ;;  %v677_v27 = vld [vmem:[%s768_s21] ss:$8 sps:$4 sm:$0xff]   ;;  %v680_v30 = vld [vmem:[%s768_s21 + $0xf0] ss:$8 sps:$4 sm:$0xff]  }
  0x17   : > { %475 = vmatpush1.bf16.msra.mxu1 %v418_v21  ;;  %v681_v31 = vld [vmem:[%s768_s21 + $0xe4] ss:$8 sps:$4 sm:$0xff]   ;;  %v683_v32 = vld [vmem:[%s768_s21 + $0xe0] ss:$8 sps:$4 sm:$0xff]   ;;  %v684_v33 = vld [vmem:[%s768_s21 + $0xd4] ss:$8 sps:$4 sm:$0xff]  }
  0x18   : > { %476 = vmatprep.subr.bf16.mxu1 %v697_v19  ;;  %v686_v34 = vld [vmem:[%s768_s21 + $0xd0] ss:$8 sps:$4 sm:$0xff]   ;;  %v687_v35 = vld [vmem:[%s768_s21 + $0xc4] ss:$8 sps:$4 sm:$0xff]   ;;  %v689_v36 = vld [vmem:[%s768_s21 + $0xc0] ss:$8 sps:$4 sm:$0xff]  }
  0x19   : > { %428 = vmatpush1.bf16.msra.mxu0 %v662_v9  ;;  %v690_v37 = vld [vmem:[%s768_s21 + $0xb4] ss:$8 sps:$4 sm:$0xff]   ;;  %v693_v38 = vld [vmem:[%s768_s21 + $0xb0] ss:$8 sps:$4 sm:$0xff]   ;;  %v695_v39 = vld [vmem:[%s768_s21 + $0xa4] ss:$8 sps:$4 sm:$0xff]  }
  0x1a   : > { %429 = vmatprep.subr.bf16.mxu0 %v663_v10  ;;  %v699_v40 = vld [vmem:[%s768_s21 + $0xa0] ss:$8 sps:$4 sm:$0xff]   ;;  %v701_v41 = vld [vmem:[%s768_s21 + $0x94] ss:$8 sps:$4 sm:$0xff]   ;;  %v705_v42 = vld [vmem:[%s768_s21 + $0x90] ss:$8 sps:$4 sm:$0xff]  }
  0x1b   : > { %477 = vmatpush1.bf16.msra.mxu1 %v700_v22  ;;  %v707_v43 = vld [vmem:[%s768_s21 + $0x84] ss:$8 sps:$4 sm:$0xff]   ;;  %v710_v44 = vld [vmem:[%s768_s21 + $0x80] ss:$8 sps:$4 sm:$0xff]  }
  0x1c   : > { %478 = vmatprep.subr.bf16.mxu1 %v703_v23 }
  0x1d   : > { %430 = vmatpush1.bf16.msra.mxu0 %v665_v11 }
  0x1e   : > { %431 = vmatprep.subr.bf16.mxu0 %v666_v12 }
  0x1f   : > { %479 = vmatpush1.bf16.msra.mxu1 %v706_v26 }
  0x21   : > { %432 = vmatpush1.bf16.msra.mxu0 %v668_v13 }
  0x22   : > { %433 = vmatprep.subr.bf16.mxu0 %v669_v14  ;;  %637 = vmatmul.mubr.msk.bf16.vlgmr.msra.gmra.mxu1 %vm412_vm1, %v709_v29 }
  0x25   : > { %434 = vmatpush1.bf16.msra.mxu0 %v671_v18 }
  0x26   : > { %435 = vmatprep.subr.bf16.mxu0 %v672_v20 }
  0x29   : > { %436 = vmatpush1.bf16.msra.mxu0 %v674_v24 }
  0x2a   : > { %437 = vmatprep.subr.bf16.mxu0 %v675_v25 }
  0x2d   : > { %438 = vmatpush1.bf16.msra.mxu0 %v677_v27 }
  0x2e   : > { %439 = vmatprep.subr.bf16.mxu0 %v678_v28 }
  0x31   : > { %440 = vmatpush2.bf16.msra.mxu0 %v680_v30 }
  0x32   : > { %441 = vmatprep.subr.bf16.mxu0 %v681_v31 }
  0x35   : > { %442 = vmatpush2.bf16.msra.mxu0 %v683_v32 }
  0x36   : > { %443 = vmatprep.subr.bf16.mxu0 %v684_v33 }
  0x39   : > { %444 = vmatpush2.bf16.msra.mxu0 %v686_v34 }
  0x3a   : > { %445 = vmatprep.subr.bf16.mxu0 %v687_v35 }
  0x3d   : > { %446 = vmatpush2.bf16.msra.mxu0 %v689_v36 }
  0x3e   : > { %447 = vmatprep.subr.bf16.mxu0 %v690_v37 }
  0x41   : > { %448 = vmatpush2.bf16.msra.mxu0 %v693_v38 }
  0x42   : > { %449 = vmatprep.subr.bf16.mxu0 %v695_v39 }
  0x45   : > { %450 = vmatpush2.bf16.msra.mxu0 %v699_v40 }
  0x46   : > { %451 = vmatprep.subr.bf16.mxu0 %v701_v41 }
  0x49   : > { %452 = vmatpush2.bf16.msra.mxu0 %v705_v42 }
  0x4a   : > { %453 = vmatprep.subr.bf16.mxu0 %v707_v43 }
  0x4d   : > { %454 = vmatpush2.bf16.msra.mxu0 %v710_v44 }
  0x50   : > { %456 = vmatmul.mubr.bf16.vlgmr.msra.gmra.mxu0 %v595_v45 }
  0x88   : > { %v215_v50 = vpop.permute.xlu0 %214 }
  0xe2   : > { %v498_v46 = vpop.f32.mrf.mxu1 }
  0xe4   : > { %v500_v47 = vpop.f32.mrf.mxu1 }
  0xe6   : > { %v502_v48 = vpop.f32.mrf.mxu1 }
  0xe8   : > { %v503_v49 = vpop.f32.mrf.mxu1 }
 0x110   : > { %v457_v51 = vpop.f32.mrf.mxu0 }
 0x111   : > { %v458_v52 = vadd.f32 %v457_v51, %v215_v50 }
 0x112   : > { %v459_v53 = vpop.f32.mrf.mxu0 }
 0x113   : > { %v460_v54 = vadd.f32 %v459_v53, %v215_v50  ;;  %v499_v56 = vadd.f32 %v498_v46, %v458_v52 }
 0x114   : > { %v461_v55 = vpop.f32.mrf.mxu0 }
 0x115   : > { %v501_v57 = vadd.f32 %v500_v47, %v460_v54 }
 0x116   : > { %v462_v58 = vpop.f32.mrf.mxu0 }
 0x117   : > { %v505_v59 = vadd.f32 %v501_v57, %v499_v56 }
 0x119   : > { %506 = vadd.xlane.f32.xlu0 %v505_v59 }
 0x1a2   : > { %v507_v60 = vpop.xlane.xlu0 %506 }
 0x1a3   : > { %v508_v61 = vmul.f32 0.00390625, %v507_v60 }
 0x1a5   : > { %v509_v62 = vsub.f32 %v499_v56, %v508_v61  ;;  %v510_v63 = vsub.f32 %v501_v57, %v508_v61 }
 0x1a7   : > { %v511_v0 = vmul.f32 %v509_v62, %v509_v62  ;;  %v512_v1 = vmul.f32 %v510_v63, %v510_v63 }
 0x1a9   : > { %v513_v2 = vadd.f32 %v512_v1, %v511_v0 }
 0x1ab   : > { %514 = vadd.xlane.f32.xlu1 %v513_v2 }
 0x234   : > { %v515_v3 = vpop.xlane.xlu1 %514 }
 0x235   : > { %v516_v4 = vmul.f32 0.00390625, %v515_v3 }
 0x237   : > { %v517_v5 = vadd.f32 1e-05, %v516_v4 }
 0x239   : > { %713 = vrsqrt.f32 %v517_v5 }
 0x246   : > { %v714_v6 = vpop.eup %713 }
 0x247   : > { %v519_v7 = vmul.f32 %v714_v6, %v509_v62  ;;  %v520_v8 = vmul.f32 %v714_v6, %v510_v63 }
 0x249   : > { %v521_v9 = vmax.f32 %v519_v7, 0.0  ;;  %v522_v10 = vmax.f32 %v520_v8, 0.0 }
 0x24b   : > { %v642_v11 = vpack.c.bf16 %v522_v10, %v521_v9 }
 0x24d   : > { %531 = vst [vmem:[%s170_s27] sm:$0xff] %v642_v11 }
 0x24e PF: > { %s13_s12 = sadd.s32 1, %s721_s12  }
 0x24f   : > { %p10_p4 = scmp.ge.s32.totalorder %s13_s12, 4  }
 0x251   :  { %12 = sbr.rel (!%p10_p4) target bundleno = 1 (0x1), region = 62 }

// kernel: _lambda_.19
= control target key start
LH: loop header
LB: loop body
LE: loop exit
PB: predicated region body
PF: predicated region fallthrough
CT: control target
= control target key end

     0   :  { %s503_s12 = smov 0   ;;  %s537_s0 = inlined_call_operand.vmem [shape: bf16[2,128,64], index: 0, kind: input, shape index: {}]   ;;  %s538_s1 = inlined_call_operand.vmem [shape: bf16[16,128], index: 1, kind: input, shape index: {}]   ;;  %s539_s2 = inlined_call_operand.vmem [shape: f32[16,1], index: 2, kind: input, shape index: {}]   ;;  %s540_s3 = inlined_call_operand.vmem [shape: bf16[2,16,64], index: 3, kind: output, shape index: {}]  }
   0x1 LB: > { %s392_s13 = sadd.s32 4294967295, %s478_s12   ;;  %p396_p0 = scmp.ge.s32.totalorder %s478_s12, 1  ;;  %s478_s12 = sphi %s503_s12, %s13_s12  }
   0x2   : > { %p137_p1 = scmp.lt.s32.totalorder %s478_s12, 3 }
   0x4   : > { %p138_p2 = pnand %p396_p0, %p137_p1 }
   0x5   : > { %p161_p3 = scmp.lt.s32.totalorder (!%p138_p2), %s392_s13, 1 }
   0x6   : > { %141 = sbr.rel (%p138_p2) target bundleno = 554 (0x22a), region = 32 }
   0xb   : > { %v480_v0 = vmov 0.0   ;;  %vm481_vm0 = vmmov 0   ;;  %v190_v1 = vld [vmem:[%s539_s2] sm:$0xff]  ;;  %s542_s13 = smov (!%p161_p3, %s392_s13), 1  ;;  %v482_v2 = vmov 0   ;;  %v191_v3 = vld [vmem:[%s539_s2 + $0x8] sm:$0xff] }
   0xc   : > { %427 = vmatprep.subr.bf16.mxu0 %v480_v0  ;;  %443 = vmatprep.mubr.msk.bf16.mxu0 %vm481_vm0, %v480_v0  ;;  %s414_s16 = sshll.u32 %s542_s13, 6  ;;  %v467_v12 = vld [vmem:[%s538_s1] sm:$0xff]   ;;  %vm297_vm1 = vcmask 523264   ;;  %s415_s24 = sshll.u32 %s542_s13, 3  ;;  %vm334_vm2 = vcmask 519168  }
   0xd   : > { %458 = vset.pattern.permute.xlu0 %v482_v2  ;;  %s165_s21 = scalar_lea.vmem %s537_s0, %s414_s16  ;;  %s170_s27 = scalar_lea.vmem %s540_s3, %s415_s24 }
   0xe   : > { %194 = vperm.xlu0 %458, %v190_v1   ;;  %v459_v4 = vld [vmem:[%s165_s21 + $0x38] sm:$0xff]   ;;  %v460_v5 = vld [vmem:[%s165_s21 + $0x30] sm:$0xff]   ;;  %v461_v6 = vld [vmem:[%s165_s21 + $0x28] sm:$0xff]  }
   0xf   : > { %428 = vmatpush3.bf16.msra.mxu0 %v459_v4  ;;  %v462_v7 = vld [vmem:[%s165_s21 + $0x20] sm:$0xff]   ;;  %v463_v8 = vld [vmem:[%s165_s21 + $0x18] sm:$0xff]   ;;  %v464_v9 = vld [vmem:[%s165_s21 + $0x10] sm:$0xff]  }
  0x10   : > { %429 = vmatprep.subr.bf16.mxu0 %v480_v0  ;;  %v465_v10 = vld [vmem:[%s165_s21 + $0x8] sm:$0xff]   ;;  %v466_v11 = vld [vmem:[%s165_s21] sm:$0xff]  }
  0x12   : > { %199 = vperm.xlu0 %458, %v191_v3  }
  0x13   : > { %430 = vmatpush3.bf16.msra.mxu0 %v460_v5 }
  0x14   : > { %431 = vmatprep.subr.bf16.mxu0 %v480_v0 }
  0x17   : > { %432 = vmatpush3.bf16.msra.mxu0 %v461_v6 }
  0x18   : > { %433 = vmatprep.subr.bf16.mxu0 %v480_v0 }
  0x1b   : > { %434 = vmatpush3.bf16.msra.mxu0 %v462_v7 }
  0x1c   : > { %435 = vmatprep.subr.bf16.mxu0 %v480_v0 }
  0x1f   : > { %436 = vmatpush3.bf16.msra.mxu0 %v463_v8 }
  0x20   : > { %437 = vmatprep.subr.bf16.mxu0 %v480_v0 }
  0x23   : > { %438 = vmatpush3.bf16.msra.mxu0 %v464_v9 }
  0x24   : > { %439 = vmatprep.subr.bf16.mxu0 %v480_v0 }
  0x27   : > { %440 = vmatpush3.bf16.msra.mxu0 %v465_v10 }
  0x28   : > { %441 = vmatprep.subr.bf16.mxu0 %v480_v0 }
  0x2b   : > { %442 = vmatpush3.bf16.msra.mxu0 %v466_v11 }
  0x2e   : > { %444 = vmatmul.mubr.bf16.vlgmr.msra.gmra.mxu0 %v467_v12 }
  0x89   : > { %v195_v13 = vpop.permute.xlu0 %194 }
  0x8d   : > { %v200_v18 = vpop.permute.xlu0 %199 }
  0xee   : > { %v290_v14 = vpop.f32.mrf.mxu0 }
  0xef   : > { %v291_v15 = vadd.f32 %v290_v14, %v195_v13 }
  0xf0   : > { %v445_v16 = vpop.f32.mrf.mxu0 }
  0xf1   : > { %v298_v17 = vsel %vm297_vm1, %v291_v15, 0.0 }
  0xf2   : > { %299 = vadd.xlane.f32.xlu1 %v298_v17  ;;  %v293_v19 = vpop.f32.mrf.mxu0 }
  0xf3   : > { %v294_v20 = vadd.f32 %v293_v19, %v200_v18 }
  0xf4   : > { %v446_v21 = vpop.f32.mrf.mxu0 }
  0xf5   : > { %v301_v22 = vsel %vm297_vm1, %v294_v20, 0.0 }
  0xf6   : > { %302 = vadd.xlane.f32.xlu1 %v301_v22 }
 0x17b   : > { %v300_v23 = vpop.xlane.xlu1 %299 }
 0x17c   : > { %v304_v24 = vmul.f32 0.015625, %v300_v23 }
 0x17e   : > { %v306_v25 = vsub.f32 %v291_v15, %v304_v24 }
 0x17f   : > { %v303_v26 = vpop.xlane.xlu1 %302 }
 0x180   : > { %v305_v27 = vmul.f32 0.015625, %v303_v26  ;;  %v308_v28 = vmul.f32 %v306_v25, %v306_v25 }
 0x182   : > { %v307_v29 = vsub.f32 %v294_v20, %v305_v27  ;;  %v310_v30 = vsel %vm297_vm1, %v308_v28, 0.0 }
 0x183   : > { %311 = vadd.xlane.f32.xlu0 %v310_v30 }
 0x184   : > { %v309_v31 = vmul.f32 %v307_v29, %v307_v29 }
 0x186   : > { %v313_v32 = vsel %vm297_vm1, %v309_v31, 0.0 }
 0x187   : > { %314 = vadd.xlane.f32.xlu1 %v313_v32 }
 0x20c   : > { %v312_v33 = vpop.xlane.xlu0 %311 }
 0x20d   : > { %v316_v34 = vmul.f32 0.015625, %v312_v33 }
 0x20f   : > { %v318_v35 = vadd.f32 1e-05, %v316_v34 }
 0x210   : > { %v315_v36 = vpop.xlane.xlu1 %314 }
 0x211   : > { %468 = vrsqrt.f32 %v318_v35  ;;  %v317_v37 = vmul.f32 0.015625, %v315_v36 }
 0x213   : > { %v319_v38 = vadd.f32 1e-05, %v317_v37 }
 0x215   : > { %470 = vrsqrt.f32 %v319_v38 }
 0x21e   : > { %v469_v39 = vpop.eup %468 }
 0x21f   : > { %v322_v40 = vmul.f32 %v469_v39, %v306_v25 }
 0x221   : > { %v324_v41 = vmax.f32 %v322_v40, 0.0 }
 0x222   : > { %v471_v42 = vpop.eup %470 }
 0x223   : > { %v416_v43 = vpack.c.bf16 %v324_v41, %v324_v41  ;;  %v323_v44 = vmul.f32 %v471_v42, %v307_v29 }
 0x225   : > { %335 = vst.msk [vmem:[%s170_s27] sm:$0xf] %vm334_vm2, %v416_v43  ;;  %v325_v45 = vmax.f32 %v323_v44, 0.0 }
 0x227   : > { %v417_v46 = vpack.c.bf16 %v325_v45, %v325_v45 }
 0x229   : > { %336 = vst.msk [vmem:[%s170_s27 + $0x4] sm:$0xf] %vm334_vm2, %v417_v46 }
 0x22a PF: > { %s13_s12 = sadd.s32 1, %s478_s12  }
 0x22b   : > { %p10_p4 = scmp.ge.s32.totalorder %s13_s12, 4  }
 0x22d   :  { %12 = sbr.rel (!%p10_p4) target bundleno = 1 (0x1), region = 62 }

// kernel: _lambda_.20
= control target key start
LH: loop header
LB: loop body
LE: loop exit
PB: predicated region body
PF: predicated region fallthrough
CT: control target
= control target key end

     0   :  { %s490_s12 = smov 0   ;;  %s527_s0 = inlined_call_operand.vmem [shape: bf16[2,144,64], index: 0, kind: input, shape index: {}]   ;;  %s528_s1 = inlined_call_operand.vmem [shape: bf16[16,144], index: 1, kind: input, shape index: {}]   ;;  %s529_s2 = inlined_call_operand.vmem [shape: f32[16,1], index: 2, kind: input, shape index: {}]   ;;  %s530_s3 = inlined_call_operand.vmem [shape: bf16[2,16,64], index: 3, kind: output, shape index: {}]  }
   0x1 LB: > { %s407_s13 = sadd.s32 4294967295, %s467_s12   ;;  %p411_p0 = scmp.ge.s32.totalorder %s467_s12, 1  ;;  %s467_s12 = sphi %s490_s12, %s13_s12  }
   0x2   : > { %p137_p1 = scmp.lt.s32.totalorder %s467_s12, 3 }
   0x4   : > { %p138_p2 = pnand %p411_p0, %p137_p1 }
   0x5   : > { %p161_p3 = scmp.lt.s32.totalorder (!%p138_p2), %s407_s13, 1 }
   0x6   : > { %141 = sbr.rel (%p138_p2) target bundleno = 559 (0x22f), region = 32 }
   0xb   : > { %v469_v0 = vmov 0   ;;  %v456_v1 = vld [vmem:[%s528_s1 + $0x4] ss:$8 sps:$4 sm:$0xff]   ;;  %vm267_vm0 = vcmask 130048   ;;  %s532_s13 = smov (!%p161_p3, %s407_s13), 1  ;;  %vm312_vm1 = vcmask 523264  }
   0xc   : > { %271 = vmatprep.subr.bf16.mxu0 %v469_v0  ;;  %444 = vset.pattern.permute.xlu0 %v469_v0  ;;  %v192_v2 = vld [vmem:[%s529_s2] sm:$0xff]  ;;  %v193_v3 = vld [vmem:[%s529_s2 + $0x8] sm:$0xff]  ;;  %s434_s20 = smul.u32 72, %s532_s13  ;;  %s431_s26 = sshll.u32 %s532_s13, 3  ;;  %vm349_vm2 = vcmask 519168  }
   0xd   : > { %196 = vperm.xlu0 %444, %v192_v2   ;;  %426 = vmatprep.mubr.msk.bf16.mxu0 %vm267_vm0, %v456_v1  ;;  %v454_v13 = vld [vmem:[%s528_s1] ss:$8 sps:$4 sm:$0xff]   ;;  %s170_s29 = scalar_lea.vmem %s530_s3, %s431_s26 }
   0xe   : > { %s165_s23 = scalar_lea.vmem %s527_s0, %s434_s20 }
   0xf   : > { %v445_v4 = vld [vmem:[%s165_s23 + $0x38] sm:$0xff]   ;;  %v446_v5 = vld [vmem:[%s165_s23 + $0x30] sm:$0xff]   ;;  %v447_v6 = vld [vmem:[%s165_s23 + $0x28] sm:$0xff]  }
  0x10   : > { %272 = vmatpush1.bf16.msra.mxu0 %v445_v4  ;;  %v448_v7 = vld [vmem:[%s165_s23 + $0x20] sm:$0xff]   ;;  %v449_v8 = vld [vmem:[%s165_s23 + $0x18] sm:$0xff]   ;;  %v450_v9 = vld [vmem:[%s165_s23 + $0x10] sm:$0xff]  }
  0x11   : > { %201 = vperm.xlu0 %444, %v193_v3   ;;  %273 = vmatprep.subr.bf16.mxu0 %v469_v0  ;;  %v451_v10 = vld [vmem:[%s165_s23 + $0x8] sm:$0xff]   ;;  %v452_v11 = vld [vmem:[%s165_s23] sm:$0xff]  }
  0x12   : > { %v453_v12 = vld [vmem:[%s165_s23 + $0x40] sm:$0xff]  }
  0x14   : > { %274 = vmatpush1.bf16.msra.mxu0 %v446_v5 }
  0x15   : > { %275 = vmatprep.subr.bf16.mxu0 %v469_v0 }
  0x18   : > { %276 = vmatpush1.bf16.msra.mxu0 %v447_v6 }
  0x19   : > { %277 = vmatprep.subr.bf16.mxu0 %v469_v0 }
  0x1c   : > { %278 = vmatpush1.bf16.msra.mxu0 %v448_v7 }
  0x1d   : > { %279 = vmatprep.subr.bf16.mxu0 %v469_v0 }
  0x20   : > { %280 = vmatpush1.bf16.msra.mxu0 %v449_v8 }
  0x21   : > { %281 = vmatprep.subr.bf16.mxu0 %v469_v0 }
  0x24   : > { %282 = vmatpush1.bf16.msra.mxu0 %v450_v9 }
  0x25   : > { %283 = vmatprep.subr.bf16.mxu0 %v469_v0 }
  0x28   : > { %284 = vmatpush1.bf16.msra.mxu0 %v451_v10 }
  0x29   : > { %285 = vmatprep.subr.bf16.mxu0 %v469_v0 }
  0x2c   : > { %286 = vmatpush1.bf16.msra.mxu0 %v452_v11 }
  0x2d   : > { %301 = vmatprep.subr.bf16.mxu0 %v469_v0 }
  0x30   : > { %302 = vmatpush2.bf16.msra.mxu0 %v453_v12 }
  0x33   : > { %304 = vmatmul.mubr.bf16.vlgmr.msra.gmra.mxu0 %v454_v13 }
  0x88   : > { %v197_v14 = vpop.permute.xlu0 %196 }
  0x8c   : > { %v202_v19 = vpop.permute.xlu0 %201 }
  0xf3   : > { %v305_v15 = vpop.f32.mrf.mxu0 }
  0xf4   : > { %v306_v16 = vadd.f32 %v305_v15, %v197_v14 }
  0xf5   : > { %v307_v17 = vpop.f32.mrf.mxu0 }
  0xf6   : > { %v313_v18 = vsel %vm312_vm1, %v306_v16, 0.0 }
  0xf7   : > { %v308_v20 = vpop.f32.mrf.mxu0  ;;  %314 = vadd.xlane.f32.xlu1 %v313_v18 }
  0xf8   : > { %v309_v21 = vadd.f32 %v308_v20, %v202_v19 }
  0xf9   : > { %v310_v22 = vpop.f32.mrf.mxu0 }
  0xfa   : > { %v316_v23 = vsel %vm312_vm1, %v309_v21, 0.0 }
  0xfb   : > { %317 = vadd.xlane.f32.xlu1 %v316_v23 }
 0x180   : > { %v315_v24 = vpop.xlane.xlu1 %314 }
 0x181   : > { %v319_v25 = vmul.f32 0.015625, %v315_v24 }
 0x183   : > { %v321_v26 = vsub.f32 %v306_v16, %v319_v25 }
 0x184   : > { %v318_v27 = vpop.xlane.xlu1 %317 }
 0x185   : > { %v320_v28 = vmul.f32 0.015625, %v318_v27  ;;  %v323_v29 = vmul.f32 %v321_v26, %v321_v26 }
 0x187   : > { %v322_v30 = vsub.f32 %v309_v21, %v320_v28  ;;  %v325_v31 = vsel %vm312_vm1, %v323_v29, 0.0 }
 0x188   : > { %326 = vadd.xlane.f32.xlu0 %v325_v31 }
 0x189   : > { %v324_v32 = vmul.f32 %v322_v30, %v322_v30 }
 0x18b   : > { %v328_v33 = vsel %vm312_vm1, %v324_v32, 0.0 }
 0x18c   : > { %329 = vadd.xlane.f32.xlu1 %v328_v33 }
 0x211   : > { %v327_v34 = vpop.xlane.xlu0 %326 }
 0x212   : > { %v331_v35 = vmul.f32 0.015625, %v327_v34 }
 0x214   : > { %v333_v36 = vadd.f32 1e-05, %v331_v35 }
 0x215   : > { %v330_v37 = vpop.xlane.xlu1 %329 }
 0x216   : > { %457 = vrsqrt.f32 %v333_v36  ;;  %v332_v38 = vmul.f32 0.015625, %v330_v37 }
 0x218   : > { %v334_v39 = vadd.f32 1e-05, %v332_v38 }
 0x21a   : > { %459 = vrsqrt.f32 %v334_v39 }
 0x223   : > { %v458_v40 = vpop.eup %457 }
 0x224   : > { %v337_v41 = vmul.f32 %v458_v40, %v321_v26 }
 0x226   : > { %v339_v42 = vmax.f32 %v337_v41, 0.0 }
 0x227   : > { %v460_v43 = vpop.eup %459 }
 0x228   : > { %v432_v44 = vpack.c.bf16 %v339_v42, %v339_v42  ;;  %v338_v45 = vmul.f32 %v460_v43, %v322_v30 }
 0x22a   : > { %350 = vst.msk [vmem:[%s170_s29] sm:$0xf] %vm349_vm2, %v432_v44  ;;  %v340_v46 = vmax.f32 %v338_v45, 0.0 }
 0x22c   : > { %v433_v47 = vpack.c.bf16 %v340_v46, %v340_v46 }
 0x22e   : > { %351 = vst.msk [vmem:[%s170_s29 + $0x4] sm:$0xf] %vm349_vm2, %v433_v47 }
 0x22f PF: > { %s13_s12 = sadd.s32 1, %s467_s12  }
 0x230   : > { %p10_p4 = scmp.ge.s32.totalorder %s13_s12, 4  }
 0x232   :  { %12 = sbr.rel (!%p10_p4) target bundleno = 1 (0x1), region = 62 }

// kernel: _lambda_.21
= control target key start
LH: loop header
LB: loop body
LE: loop exit
PB: predicated region body
PF: predicated region fallthrough
CT: control target
= control target key end

     0   :  { %s488_s12 = smov 0   ;;  %s525_s0 = inlined_call_operand.vmem [shape: bf16[2,144,64], index: 0, kind: input, shape index: {}]   ;;  %s526_s1 = inlined_call_operand.vmem [shape: bf16[16,144], index: 1, kind: input, shape index: {}]   ;;  %s527_s2 = inlined_call_operand.vmem [shape: f32[16,1], index: 2, kind: input, shape index: {}]   ;;  %s528_s3 = inlined_call_operand.vmem [shape: bf16[2,16,64], index: 3, kind: output, shape index: {}]  }
   0x1 LB: > { %s405_s13 = sadd.s32 4294967295, %s465_s12   ;;  %p409_p0 = scmp.ge.s32.totalorder %s465_s12, 1  ;;  %s465_s12 = sphi %s488_s12, %s13_s12  }
   0x2   : > { %p137_p1 = scmp.lt.s32.totalorder %s465_s12, 3 }
   0x4   : > { %p138_p2 = pnand %p409_p0, %p137_p1 }
   0x5   : > { %p161_p3 = scmp.lt.s32.totalorder (!%p138_p2), %s405_s13, 1 }
   0x6   : > { %141 = sbr.rel (%p138_p2) target bundleno = 557 (0x22d), region = 32 }
   0xb   : > { %v467_v0 = vmov 0   ;;  %v454_v1 = vld [vmem:[%s526_s1 + $0x4] ss:$8 sps:$4 sm:$0xff]   ;;  %vm267_vm0 = vcmask 130048   ;;  %s530_s13 = smov (!%p161_p3, %s405_s13), 1  ;;  %vm312_vm1 = vcmask 523264  }
   0xc   : > { %271 = vmatprep.subr.bf16.mxu0 %v467_v0  ;;  %442 = vset.pattern.permute.xlu0 %v467_v0  ;;  %v192_v2 = vld [vmem:[%s527_s2] sm:$0xff]  ;;  %v193_v3 = vld [vmem:[%s527_s2 + $0x8] sm:$0xff]  ;;  %s432_s20 = smul.u32 72, %s530_s13  ;;  %s429_s26 = sshll.u32 %s530_s13, 3  ;;  %vm347_vm2 = vcmask 519168  }
   0xd   : > { %196 = vperm.xlu0 %442, %v192_v2   ;;  %424 = vmatprep.mubr.msk.bf16.mxu0 %vm267_vm0, %v454_v1  ;;  %v452_v13 = vld [vmem:[%s526_s1] ss:$8 sps:$4 sm:$0xff]   ;;  %s170_s29 = scalar_lea.vmem %s528_s3, %s429_s26 }
   0xe   : > { %s165_s23 = scalar_lea.vmem %s525_s0, %s432_s20 }
   0xf   : > { %v443_v4 = vld [vmem:[%s165_s23 + $0x38] sm:$0xff]   ;;  %v444_v5 = vld [vmem:[%s165_s23 + $0x30] sm:$0xff]   ;;  %v445_v6 = vld [vmem:[%s165_s23 + $0x28] sm:$0xff]  }
  0x10   : > { %272 = vmatpush1.bf16.msra.mxu0 %v443_v4  ;;  %v446_v7 = vld [vmem:[%s165_s23 + $0x20] sm:$0xff]   ;;  %v447_v8 = vld [vmem:[%s165_s23 + $0x18] sm:$0xff]   ;;  %v448_v9 = vld [vmem:[%s165_s23 + $0x10] sm:$0xff]  }
  0x11   : > { %201 = vperm.xlu0 %442, %v193_v3   ;;  %273 = vmatprep.subr.bf16.mxu0 %v467_v0  ;;  %v449_v10 = vld [vmem:[%s165_s23 + $0x8] sm:$0xff]   ;;  %v450_v11 = vld [vmem:[%s165_s23] sm:$0xff]  }
  0x12   : > { %v451_v12 = vld [vmem:[%s165_s23 + $0x40] sm:$0xff]  }
  0x14   : > { %274 = vmatpush1.bf16.msra.mxu0 %v444_v5 }
  0x15   : > { %275 = vmatprep.subr.bf16.mxu0 %v467_v0 }
  0x18   : > { %276 = vmatpush1.bf16.msra.mxu0 %v445_v6 }
  0x19   : > { %277 = vmatprep.subr.bf16.mxu0 %v467_v0 }
  0x1c   : > { %278 = vmatpush1.bf16.msra.mxu0 %v446_v7 }
  0x1d   : > { %279 = vmatprep.subr.bf16.mxu0 %v467_v0 }
  0x20   : > { %280 = vmatpush1.bf16.msra.mxu0 %v447_v8 }
  0x21   : > { %281 = vmatprep.subr.bf16.mxu0 %v467_v0 }
  0x24   : > { %282 = vmatpush1.bf16.msra.mxu0 %v448_v9 }
  0x25   : > { %283 = vmatprep.subr.bf16.mxu0 %v467_v0 }
  0x28   : > { %284 = vmatpush1.bf16.msra.mxu0 %v449_v10 }
  0x29   : > { %285 = vmatprep.subr.bf16.mxu0 %v467_v0 }
  0x2c   : > { %286 = vmatpush1.bf16.msra.mxu0 %v450_v11 }
  0x2d   : > { %301 = vmatprep.subr.bf16.mxu0 %v467_v0 }
  0x30   : > { %302 = vmatpush2.bf16.msra.mxu0 %v451_v12 }
  0x33   : > { %304 = vmatmul.mubr.bf16.vlgmr.msra.gmra.mxu0 %v452_v13 }
  0x88   : > { %v197_v14 = vpop.permute.xlu0 %196 }
  0x8c   : > { %v202_v19 = vpop.permute.xlu0 %201 }
  0xf3   : > { %v305_v15 = vpop.f32.mrf.mxu0 }
  0xf4   : > { %v306_v16 = vadd.f32 %v305_v15, %v197_v14 }
  0xf5   : > { %v307_v17 = vpop.f32.mrf.mxu0 }
  0xf6   : > { %v313_v18 = vsel %vm312_vm1, %v306_v16, 0.0 }
  0xf7   : > { %v308_v20 = vpop.f32.mrf.mxu0  ;;  %314 = vadd.xlane.f32.xlu1 %v313_v18 }
  0xf8   : > { %v309_v21 = vadd.f32 %v308_v20, %v202_v19 }
  0xf9   : > { %v310_v22 = vpop.f32.mrf.mxu0 }
  0xfa   : > { %v316_v23 = vsel %vm312_vm1, %v309_v21, 0.0 }
  0xfb   : > { %317 = vadd.xlane.f32.xlu1 %v316_v23 }
 0x180   : > { %v315_v24 = vpop.xlane.xlu1 %314 }
 0x181   : > { %v319_v25 = vmul.f32 0.015625, %v315_v24 }
 0x183   : > { %v321_v26 = vsub.f32 %v306_v16, %v319_v25 }
 0x184   : > { %v318_v27 = vpop.xlane.xlu1 %317 }
 0x185   : > { %v320_v28 = vmul.f32 0.015625, %v318_v27  ;;  %v323_v29 = vmul.f32 %v321_v26, %v321_v26 }
 0x187   : > { %v322_v30 = vsub.f32 %v309_v21, %v320_v28  ;;  %v325_v31 = vsel %vm312_vm1, %v323_v29, 0.0 }
 0x188   : > { %326 = vadd.xlane.f32.xlu0 %v325_v31 }
 0x189   : > { %v324_v32 = vmul.f32 %v322_v30, %v322_v30 }
 0x18b   : > { %v328_v33 = vsel %vm312_vm1, %v324_v32, 0.0 }
 0x18c   : > { %329 = vadd.xlane.f32.xlu1 %v328_v33 }
 0x211   : > { %v327_v34 = vpop.xlane.xlu0 %326 }
 0x212   : > { %v331_v35 = vmul.f32 0.015625, %v327_v34 }
 0x214   : > { %v333_v36 = vadd.f32 1e-05, %v331_v35 }
 0x215   : > { %v330_v37 = vpop.xlane.xlu1 %329 }
 0x216   : > { %455 = vrsqrt.f32 %v333_v36  ;;  %v332_v38 = vmul.f32 0.015625, %v330_v37 }
 0x218   : > { %v334_v39 = vadd.f32 1e-05, %v332_v38 }
 0x21a   : > { %457 = vrsqrt.f32 %v334_v39 }
 0x223   : > { %v456_v40 = vpop.eup %455 }
 0x224   : > { %v337_v41 = vmul.f32 %v456_v40, %v321_v26 }
 0x226   : > { %v430_v42 = vpack.c.bf16 %v337_v41, %v337_v41 }
 0x227   : > { %v458_v43 = vpop.eup %457 }
 0x228   : > { %348 = vst.msk [vmem:[%s170_s29] sm:$0xf] %vm347_vm2, %v430_v42  ;;  %v338_v44 = vmul.f32 %v458_v43, %v322_v30 }
 0x22a   : > { %v431_v45 = vpack.c.bf16 %v338_v44, %v338_v44 }
 0x22c   : > { %349 = vst.msk [vmem:[%s170_s29 + $0x4] sm:$0xf] %vm347_vm2, %v431_v45 }
 0x22d PF: > { %s13_s12 = sadd.s32 1, %s465_s12  }
 0x22e   : > { %p10_p4 = scmp.ge.s32.totalorder %s13_s12, 4  }
 0x230   :  { %12 = sbr.rel (!%p10_p4) target bundleno = 1 (0x1), region = 62 }

// kernel: _lambda_.32
= control target key start
LH: loop header
LB: loop body
LE: loop exit
PB: predicated region body
PF: predicated region fallthrough
CT: control target
= control target key end

     0   :  { %s850_s12 = smov 0   ;;  %s944_s0 = inlined_call_operand.vmem [shape: bf16[2,400,256], index: 0, kind: input, shape index: {}]   ;;  %s945_s1 = inlined_call_operand.vmem [shape: bf16[8,400], index: 1, kind: input, shape index: {}]   ;;  %s946_s2 = inlined_call_operand.vmem [shape: f32[8,1], index: 2, kind: input, shape index: {}]   ;;  %s947_s3 = inlined_call_operand.vmem [shape: bf16[2,8,256], index: 3, kind: output, shape index: {}]  }
   0x1 LB: > { %s661_s13 = sadd.s32 4294967295, %s827_s12   ;;  %p665_p0 = scmp.ge.s32.totalorder %s827_s12, 1  ;;  %s827_s12 = sphi %s850_s12, %s13_s12  }
   0x2   : > { %p137_p1 = scmp.lt.s32.totalorder %s827_s12, 3 }
   0x4   : > { %p138_p2 = pnand %p665_p0, %p137_p1 }
   0x5   : > { %p161_p3 = scmp.lt.s32.totalorder (!%p138_p2), %s661_s13, 1 }
   0x6   : > { %141 = sbr.rel (%p138_p2) target bundleno = 590 (0x24e), region = 32 }
   0xb   : > { %v861_v0 = vld [vmem:[%s945_s1 + $0x8] sm:$0xff]  ;;  %vm493_vm0 = vcmask 130048   ;;  %v866_v1 = vld [vmem:[%s945_s1] sm:$0xff]  ;;  %v829_v5 = vmov 0   ;;  %s949_s13 = smov (!%p161_p3, %s661_s13), 1 }
   0xc   : > { %v224_v2 = vld [vmem:[%s946_s2] sm:$0xff]  ;;  %v672_v3 = vcombine.high %v861_v0, %v861_v0  ;;  %v670_v4 = vcombine.high %v866_v1, %v866_v1  ;;  %739 = vset.pattern.permute.xlu0 %v829_v5  ;;  %s729_s20 = smul.u32 400, %s949_s13  ;;  %v671_v48 = vcombine.low %v861_v0, %v861_v0  ;;  %v669_v57 = vcombine.low %v866_v1, %v866_v1  ;;  %s727_s24 = sshll.u32 %s949_s13, 3 }
   0xd   : > { %227 = vperm.xlu0 %739, %v224_v2   ;;  %s170_s27 = scalar_lea.vmem %s947_s3, %s727_s24 }
   0xe   : > { %723 = vmatprep.mubr.msk.bf16.mxu1 %vm493_vm0, %v672_v3  ;;  %529 = vmatprep.mubr.bf16.mxu0 %v670_v4  ;;  %s881_s23 = scalar_lea.vmem %s944_s0, %s729_s20 }
   0xf   : > { %v740_v6 = vld [vmem:[%s881_s23 + $0x74] ss:$8 sps:$4 sm:$0xff]   ;;  %v742_v7 = vld [vmem:[%s881_s23 + $0x70] ss:$8 sps:$4 sm:$0xff]   ;;  %v743_v8 = vld [vmem:[%s881_s23 + $0x64] ss:$8 sps:$4 sm:$0xff]  }
  0x10   : > { %497 = vmatprep.subr.bf16.mxu0 %v740_v6  ;;  %v745_v9 = vld [vmem:[%s881_s23 + $0x60] ss:$8 sps:$4 sm:$0xff]   ;;  %v746_v10 = vld [vmem:[%s881_s23 + $0x54] ss:$8 sps:$4 sm:$0xff]   ;;  %v748_v11 = vld [vmem:[%s881_s23 + $0x50] ss:$8 sps:$4 sm:$0xff]  }
  0x11   : > { %498 = vmatpush1.bf16.msra.mxu0 %v742_v7  ;;  %v749_v12 = vld [vmem:[%s881_s23 + $0x44] ss:$8 sps:$4 sm:$0xff]   ;;  %v760_v13 = vld [vmem:[%s881_s23 + $0x174] ss:$8 sps:$4 sm:$0xff]   ;;  %v763_v14 = vld [vmem:[%s881_s23 + $0x170] ss:$8 sps:$4 sm:$0xff]  }
  0x12   : > { %499 = vmatprep.subr.bf16.mxu0 %v743_v8  ;;  %v751_v15 = vld [vmem:[%s881_s23 + $0x40] ss:$8 sps:$4 sm:$0xff]   ;;  %538 = vmatprep.subr.bf16.mxu1 %v760_v13  ;;  %v752_v16 = vld [vmem:[%s881_s23 + $0x34] ss:$8 sps:$4 sm:$0xff]   ;;  %v766_v17 = vld [vmem:[%s881_s23 + $0x164] ss:$8 sps:$4 sm:$0xff]  }
  0x13   : > { %539 = vmatpush1.bf16.msra.mxu1 %v763_v14  ;;  %v769_v18 = vld [vmem:[%s881_s23 + $0x160] ss:$8 sps:$4 sm:$0xff]   ;;  %v754_v19 = vld [vmem:[%s881_s23 + $0x30] ss:$8 sps:$4 sm:$0xff]   ;;  %v755_v20 = vld [vmem:[%s881_s23 + $0x24] ss:$8 sps:$4 sm:$0xff]  }
  0x14   : > { %540 = vmatprep.subr.bf16.mxu1 %v766_v17  ;;  %v772_v21 = vld [vmem:[%s881_s23 + $0x154] ss:$8 sps:$4 sm:$0xff]   ;;  %v775_v22 = vld [vmem:[%s881_s23 + $0x150] ss:$8 sps:$4 sm:$0xff]   ;;  %v778_v23 = vld [vmem:[%s881_s23 + $0x144] ss:$8 sps:$4 sm:$0xff]  }
  0x15   : > { %500 = vmatpush1.bf16.msra.mxu0 %v745_v9  ;;  %v757_v24 = vld [vmem:[%s881_s23 + $0x20] ss:$8 sps:$4 sm:$0xff]   ;;  %v758_v25 = vld [vmem:[%s881_s23 + $0x14] ss:$8 sps:$4 sm:$0xff]   ;;  %v762_v28 = vld [vmem:[%s881_s23 + $0x10] ss:$8 sps:$4 sm:$0xff]  }
  0x16   : > { %501 = vmatprep.subr.bf16.mxu0 %v746_v10  ;;  %v781_v26 = vld [vmem:[%s881_s23 + $0x140] ss:$8 sps:$4 sm:$0xff]   ;;  %v784_v27 = vld [vmem:[%s881_s23 + $0x134] ss:$8 sps:$4 sm:$0xff]   ;;  %v764_v29 = vld [vmem:[%s881_s23 + $0x4] ss:$8 sps:$4 sm:$0xff]  }
  0x17   : > { %541 = vmatpush1.bf16.msra.mxu1 %v769_v18  ;;  %v787_v30 = vld [vmem:[%s881_s23 + $0x130] ss:$8 sps:$4 sm:$0xff]   ;;  %v790_v31 = vld [vmem:[%s881_s23 + $0x124] ss:$8 sps:$4 sm:$0xff]   ;;  %v768_v32 = vld [vmem:[%s881_s23] ss:$8 sps:$4 sm:$0xff]  }
  0x18   : > { %542 = vmatprep.subr.bf16.mxu1 %v772_v21  ;;  %v770_v33 = vld [vmem:[%s881_s23 + $0xf4] ss:$8 sps:$4 sm:$0xff]   ;;  %v793_v34 = vld [vmem:[%s881_s23 + $0x120] ss:$8 sps:$4 sm:$0xff]   ;;  %v774_v36 = vld [vmem:[%s881_s23 + $0xf0] ss:$8 sps:$4 sm:$0xff]  }
  0x19   : > { %502 = vmatpush1.bf16.msra.mxu0 %v748_v11  ;;  %v796_v35 = vld [vmem:[%s881_s23 + $0x114] ss:$8 sps:$4 sm:$0xff]   ;;  %v776_v37 = vld [vmem:[%s881_s23 + $0xe4] ss:$8 sps:$4 sm:$0xff]   ;;  %v799_v38 = vld [vmem:[%s881_s23 + $0x110] ss:$8 sps:$4 sm:$0xff]  }
  0x1a   : > { %503 = vmatprep.subr.bf16.mxu0 %v749_v12  ;;  %v802_v39 = vld [vmem:[%s881_s23 + $0x104] ss:$8 sps:$4 sm:$0xff]   ;;  %v780_v40 = vld [vmem:[%s881_s23 + $0xe0] ss:$8 sps:$4 sm:$0xff]   ;;  %v782_v41 = vld [vmem:[%s881_s23 + $0xd4] ss:$8 sps:$4 sm:$0xff]  }
  0x1b   : > { %543 = vmatpush1.bf16.msra.mxu1 %v775_v22  ;;  %v805_v42 = vld [vmem:[%s881_s23 + $0x100] ss:$8 sps:$4 sm:$0xff]   ;;  %v808_v43 = vld [vmem:[%s881_s23 + $0x184] ss:$8 sps:$4 sm:$0xff]   ;;  %v786_v44 = vld [vmem:[%s881_s23 + $0xd0] ss:$8 sps:$4 sm:$0xff]  }
  0x1c   : > { %544 = vmatprep.subr.bf16.mxu1 %v778_v23  ;;  %v788_v45 = vld [vmem:[%s881_s23 + $0xc4] ss:$8 sps:$4 sm:$0xff]   ;;  %v811_v46 = vld [vmem:[%s881_s23 + $0x180] ss:$8 sps:$4 sm:$0xff]   ;;  %v794_v49 = vld [vmem:[%s881_s23 + $0xb4] ss:$8 sps:$4 sm:$0xff]  }
  0x1d   : > { %504 = vmatpush1.bf16.msra.mxu0 %v751_v15  ;;  %v792_v47 = vld [vmem:[%s881_s23 + $0xc0] ss:$8 sps:$4 sm:$0xff]   ;;  %v798_v50 = vld [vmem:[%s881_s23 + $0xb0] ss:$8 sps:$4 sm:$0xff]   ;;  %v800_v51 = vld [vmem:[%s881_s23 + $0xa4] ss:$8 sps:$4 sm:$0xff]  }
  0x1e   : > { %505 = vmatprep.subr.bf16.mxu0 %v752_v16  ;;  %v804_v52 = vld [vmem:[%s881_s23 + $0xa0] ss:$8 sps:$4 sm:$0xff]   ;;  %v806_v53 = vld [vmem:[%s881_s23 + $0x94] ss:$8 sps:$4 sm:$0xff]   ;;  %v810_v54 = vld [vmem:[%s881_s23 + $0x90] ss:$8 sps:$4 sm:$0xff]  }
  0x1f   : > { %545 = vmatpush1.bf16.msra.mxu1 %v781_v26  ;;  %v814_v55 = vld [vmem:[%s881_s23 + $0x84] ss:$8 sps:$4 sm:$0xff]   ;;  %v816_v56 = vld [vmem:[%s881_s23 + $0x80] ss:$8 sps:$4 sm:$0xff]  }
  0x20   : > { %546 = vmatprep.subr.bf16.mxu1 %v784_v27 }
  0x21   : > { %506 = vmatpush1.bf16.msra.mxu0 %v754_v19 }
  0x22   : > { %507 = vmatprep.subr.bf16.mxu0 %v755_v20 }
  0x23   : > { %547 = vmatpush1.bf16.msra.mxu1 %v787_v30 }
  0x24   : > { %548 = vmatprep.subr.bf16.mxu1 %v790_v31 }
  0x25   : > { %508 = vmatpush1.bf16.msra.mxu0 %v757_v24 }
  0x26   : > { %509 = vmatprep.subr.bf16.mxu0 %v758_v25 }
  0x27   : > { %549 = vmatpush1.bf16.msra.mxu1 %v793_v34 }
  0x28   : > { %550 = vmatprep.subr.bf16.mxu1 %v796_v35 }
  0x29   : > { %510 = vmatpush1.bf16.msra.mxu0 %v762_v28 }
  0x2a   : > { %511 = vmatprep.subr.bf16.mxu0 %v764_v29 }
  0x2b   : > { %551 = vmatpush1.bf16.msra.mxu1 %v799_v38 }
  0x2c   : > { %552 = vmatprep.subr.bf16.mxu1 %v802_v39 }
  0x2d   : > { %512 = vmatpush1.bf16.msra.mxu0 %v768_v32 }
  0x2e   : > { %513 = vmatprep.subr.bf16.mxu0 %v770_v33 }
  0x2f   : > { %553 = vmatpush1.bf16.msra.mxu1 %v805_v42 }
  0x30   : > { %568 = vmatprep.subr.bf16.mxu1 %v808_v43 }
  0x31   : > { %514 = vmatpush2.bf16.msra.mxu0 %v774_v36 }
  0x32   : > { %515 = vmatprep.subr.bf16.mxu0 %v776_v37 }
  0x33   : > { %569 = vmatpush2.bf16.msra.mxu1 %v811_v46 }
  0x35   : > { %516 = vmatpush2.bf16.msra.mxu0 %v780_v40 }
  0x36   : > { %517 = vmatprep.subr.bf16.mxu0 %v782_v41  ;;  %571 = vmatmul.mubr.bf16.vlgmr.msra.gmra.mxu1 %v671_v48 }
  0x39   : > { %518 = vmatpush2.bf16.msra.mxu0 %v786_v44 }
  0x3a   : > { %519 = vmatprep.subr.bf16.mxu0 %v788_v45 }
  0x3d   : > { %520 = vmatpush2.bf16.msra.mxu0 %v792_v47 }
  0x3e   : > { %521 = vmatprep.subr.bf16.mxu0 %v794_v49 }
  0x41   : > { %522 = vmatpush2.bf16.msra.mxu0 %v798_v50 }
  0x42   : > { %523 = vmatprep.subr.bf16.mxu0 %v800_v51 }
  0x45   : > { %524 = vmatpush2.bf16.msra.mxu0 %v804_v52 }
  0x46   : > { %525 = vmatprep.subr.bf16.mxu0 %v806_v53 }
  0x49   : > { %526 = vmatpush2.bf16.msra.mxu0 %v810_v54 }
  0x4a   : > { %527 = vmatprep.subr.bf16.mxu0 %v814_v55 }
  0x4d   : > { %528 = vmatpush2.bf16.msra.mxu0 %v816_v56 }
  0x50   : > { %530 = vmatmul.mubr.bf16.vlgmr.msra.gmra.mxu0 %v669_v57 }
  0x88   : > { %v228_v62 = vpop.permute.xlu0 %227 }
  0xf6   : > { %v572_v58 = vpop.f32.mrf.mxu1 }
  0xf8   : > { %v574_v59 = vpop.f32.mrf.mxu1 }
  0xfa   : > { %v576_v60 = vpop.f32.mrf.mxu1 }
  0xfc   : > { %v577_v61 = vpop.f32.mrf.mxu1 }
 0x110   : > { %v531_v63 = vpop.f32.mrf.mxu0 }
 0x111   : > { %v532_v0 = vadd.f32 %v531_v63, %v228_v62 }
 0x112   : > { %v533_v2 = vpop.f32.mrf.mxu0 }
 0x113   : > { %v534_v3 = vadd.f32 %v533_v2, %v228_v62  ;;  %v573_v5 = vadd.f32 %v572_v58, %v532_v0 }
 0x114   : > { %v535_v4 = vpop.f32.mrf.mxu0 }
 0x115   : > { %v575_v6 = vadd.f32 %v574_v59, %v534_v3 }
 0x116   : > { %v536_v7 = vpop.f32.mrf.mxu0 }
 0x117   : > { %v579_v8 = vadd.f32 %v575_v6, %v573_v5 }
 0x119   : > { %580 = vadd.xlane.f32.xlu0 %v579_v8 }
 0x1a2   : > { %v581_v9 = vpop.xlane.xlu0 %580 }
 0x1a3   : > { %v582_v1 = vmul.f32 0.00390625, %v581_v9 }
 0x1a5   : > { %v583_v10 = vsub.f32 %v573_v5, %v582_v1  ;;  %v584_v11 = vsub.f32 %v575_v6, %v582_v1 }
 0x1a7   : > { %v585_v12 = vmul.f32 %v583_v10, %v583_v10  ;;  %v586_v13 = vmul.f32 %v584_v11, %v584_v11 }
 0x1a9   : > { %v587_v14 = vadd.f32 %v586_v13, %v585_v12 }
 0x1ab   : > { %588 = vadd.xlane.f32.xlu1 %v587_v14 }
 0x234   : > { %v589_v15 = vpop.xlane.xlu1 %588 }
 0x235   : > { %v590_v16 = vmul.f32 0.00390625, %v589_v15 }
 0x237   : > { %v591_v17 = vadd.f32 1e-05, %v590_v16 }
 0x239   : > { %819 = vrsqrt.f32 %v591_v17 }
 0x246   : > { %v820_v18 = vpop.eup %819 }
 0x247   : > { %v593_v19 = vmul.f32 %v820_v18, %v583_v10  ;;  %v594_v20 = vmul.f32 %v820_v18, %v584_v11 }
 0x249   : > { %v595_v21 = vmax.f32 %v593_v19, 0.0  ;;  %v596_v22 = vmax.f32 %v594_v20, 0.0 }
 0x24b   : > { %v728_v23 = vpack.c.bf16 %v596_v22, %v595_v21 }
 0x24d   : > { %605 = vst [vmem:[%s170_s27] sm:$0xff] %v728_v23 }
 0x24e PF: > { %s13_s12 = sadd.s32 1, %s827_s12  }
 0x24f   : > { %p10_p4 = scmp.ge.s32.totalorder %s13_s12, 4  }
 0x251   :  { %12 = sbr.rel (!%p10_p4) target bundleno = 1 (0x1), region = 62 }

// kernel: _lambda_.33
= control target key start
LH: loop header
LB: loop body
LE: loop exit
PB: predicated region body
PF: predicated region fallthrough
CT: control target
= control target key end

     0   :  { %s852_s12 = smov 0   ;;  %s945_s0 = inlined_call_operand.vmem [shape: bf16[2,392,256], index: 0, kind: input, shape index: {}]   ;;  %s946_s1 = inlined_call_operand.vmem [shape: bf16[3,392], index: 1, kind: input, shape index: {}]   ;;  %s947_s2 = inlined_call_operand.vmem [shape: f32[3,1], index: 2, kind: input, shape index: {}]   ;;  %s948_s3 = inlined_call_operand.vmem [shape: bf16[2,3,256], index: 3, kind: output, shape index: {}]  }
   0x1 LB: > { %s667_s13 = sadd.s32 4294967295, %s828_s12   ;;  %p671_p0 = scmp.ge.s32.totalorder %s828_s12, 1  ;;  %s828_s12 = sphi %s852_s12, %s13_s12  }
   0x2   : > { %p137_p1 = scmp.lt.s32.totalorder %s828_s12, 3 }
   0x4   : > { %p138_p2 = pnand %p671_p0, %p137_p1 }
   0x5   : > { %p161_p3 = scmp.lt.s32.totalorder (!%p138_p2), %s667_s13, 1 }
   0x6   : > { %141 = sbr.rel (%p138_p2) target bundleno = 299 (0x12b), region = 32 }
   0xb   : > { %v172_v0 = vld [vmem:[%s946_s1] sm:$0xff]  ;;  %v233_v1 = vlaneseq  ;;  %v830_v2 = vmov 1983009808   ;;  %s950_s13 = smov (!%p161_p3, %s667_s13), 1  ;;  %v831_v6 = vmov 0   ;;  %vm494_vm0 = vcmask 64512  }
   0xc   : > { %v231_v3 = vunpack.c.l.s4 %v830_v2  ;;  %v222_v4 = vld [vmem:[%s947_s2] sm:$0x7]  ;;  %742 = vset.pattern.permute.xlu0 %v831_v6  ;;  %v229_v7 = vcombine.high %v172_v0, %v172_v0  ;;  %s731_s18 = smul.u32 392, %s950_s13  ;;  %vm498_vm1 = vcmask 1043456   ;;  %vm602_vm2 = vcmask 1041408   ;;  %s730_s22 = sshll.u32 %s950_s13, 2 }
   0xd   : > { %v234_v5 = vshrl.u32 %v233_v1, 7  ;;  %225 = vperm.xlu0 %742, %v222_v4   ;;  %vm603_vm3 = vsmask.f32 1280  ;;  %vm605_vm4 = vcmask 1043458   ;;  %vm606_vm5 = vsmask.f32 3328  ;;  %s170_s25 = scalar_lea.vmem %s948_s3, %s730_s22 }
   0xe   : > { %v232_v8 = vunpack.c.0.s8 %v231_v3  ;;  %s874_s21 = scalar_lea.vmem %s945_s0, %s731_s18  ;;  %vm604_vm6 = vmand %vm602_vm2, %vm603_vm3 }
   0xf   : > { %v743_v10 = vld [vmem:[%s874_s21 + $0x74] ss:$8 sps:$4 sm:$0xff]   ;;  %v745_v13 = vld [vmem:[%s874_s21 + $0x70] ss:$8 sps:$4 sm:$0xff]   ;;  %v746_v14 = vld [vmem:[%s874_s21 + $0x64] ss:$8 sps:$4 sm:$0xff]  }
  0x10   : > { %v869_v9 = vsub.s32 %v232_v8, %v234_v5  ;;  %505 = vmatprep.subr.bf16.mxu0 %v743_v10  ;;  %v748_v17 = vld [vmem:[%s874_s21 + $0x60] ss:$8 sps:$4 sm:$0xff]   ;;  %v749_v18 = vld [vmem:[%s874_s21 + $0x54] ss:$8 sps:$4 sm:$0xff]   ;;  %v751_v19 = vld [vmem:[%s874_s21 + $0x50] ss:$8 sps:$4 sm:$0xff]  }
  0x11   : > { %506 = vmatpush1.bf16.msra.mxu0 %v745_v13  ;;  %v752_v20 = vld [vmem:[%s874_s21 + $0x44] ss:$8 sps:$4 sm:$0xff]   ;;  %v763_v21 = vld [vmem:[%s874_s21 + $0x174] ss:$8 sps:$4 sm:$0xff]   ;;  %v766_v22 = vld [vmem:[%s874_s21 + $0x170] ss:$8 sps:$4 sm:$0xff]  }
  0x12   : > { %v878_v11 = vrot.slane %v229_v7, %v869_v9  ;;  %v881_v12 = vrot.slane %v172_v0, %v869_v9  ;;  %507 = vmatprep.subr.bf16.mxu0 %v746_v14  ;;  %v754_v23 = vld [vmem:[%s874_s21 + $0x40] ss:$8 sps:$4 sm:$0xff]   ;;  %546 = vmatprep.subr.bf16.mxu1 %v763_v21  ;;  %v755_v24 = vld [vmem:[%s874_s21 + $0x34] ss:$8 sps:$4 sm:$0xff]   ;;  %v769_v25 = vld [vmem:[%s874_s21 + $0x164] ss:$8 sps:$4 sm:$0xff]  }
  0x13   : > { %547 = vmatpush1.bf16.msra.mxu1 %v766_v22  ;;  %v772_v26 = vld [vmem:[%s874_s21 + $0x160] ss:$8 sps:$4 sm:$0xff]   ;;  %v757_v27 = vld [vmem:[%s874_s21 + $0x30] ss:$8 sps:$4 sm:$0xff]   ;;  %v758_v28 = vld [vmem:[%s874_s21 + $0x24] ss:$8 sps:$4 sm:$0xff]  }
  0x14   : > { %v245_v15 = vcombine.high %v878_v11, %v878_v11  ;;  %v244_v16 = vcombine.high %v881_v12, %v881_v12  ;;  %548 = vmatprep.subr.bf16.mxu1 %v769_v25  ;;  %v775_v29 = vld [vmem:[%s874_s21 + $0x154] ss:$8 sps:$4 sm:$0xff]   ;;  %v778_v30 = vld [vmem:[%s874_s21 + $0x150] ss:$8 sps:$4 sm:$0xff]   ;;  %v781_v31 = vld [vmem:[%s874_s21 + $0x144] ss:$8 sps:$4 sm:$0xff]  }
  0x15   : > { %508 = vmatpush1.bf16.msra.mxu0 %v748_v17  ;;  %v760_v32 = vld [vmem:[%s874_s21 + $0x20] ss:$8 sps:$4 sm:$0xff]   ;;  %v761_v33 = vld [vmem:[%s874_s21 + $0x14] ss:$8 sps:$4 sm:$0xff]   ;;  %v765_v36 = vld [vmem:[%s874_s21 + $0x10] ss:$8 sps:$4 sm:$0xff]  }
  0x16   : > { %726 = vmatprep.mubr.msk.bf16.mxu1 %vm494_vm0, %v245_v15  ;;  %537 = vmatprep.mubr.bf16.mxu0 %v244_v16  ;;  %v784_v34 = vld [vmem:[%s874_s21 + $0x140] ss:$8 sps:$4 sm:$0xff]   ;;  %v787_v35 = vld [vmem:[%s874_s21 + $0x134] ss:$8 sps:$4 sm:$0xff]   ;;  %v767_v37 = vld [vmem:[%s874_s21 + $0x4] ss:$8 sps:$4 sm:$0xff]  }
  0x17   : > { %509 = vmatprep.subr.bf16.mxu0 %v749_v18  ;;  %549 = vmatpush1.bf16.msra.mxu1 %v772_v26  ;;  %v790_v38 = vld [vmem:[%s874_s21 + $0x130] ss:$8 sps:$4 sm:$0xff]   ;;  %v793_v39 = vld [vmem:[%s874_s21 + $0x124] ss:$8 sps:$4 sm:$0xff]   ;;  %v771_v40 = vld [vmem:[%s874_s21] ss:$8 sps:$4 sm:$0xff]  }
  0x18   : > { %550 = vmatprep.subr.bf16.mxu1 %v775_v29  ;;  %v773_v41 = vld [vmem:[%s874_s21 + $0xf4] ss:$8 sps:$4 sm:$0xff]   ;;  %v796_v42 = vld [vmem:[%s874_s21 + $0x120] ss:$8 sps:$4 sm:$0xff]   ;;  %v777_v44 = vld [vmem:[%s874_s21 + $0xf0] ss:$8 sps:$4 sm:$0xff]  }
  0x19   : > { %510 = vmatpush1.bf16.msra.mxu0 %v751_v19  ;;  %v799_v43 = vld [vmem:[%s874_s21 + $0x114] ss:$8 sps:$4 sm:$0xff]   ;;  %v779_v45 = vld [vmem:[%s874_s21 + $0xe4] ss:$8 sps:$4 sm:$0xff]   ;;  %v802_v46 = vld [vmem:[%s874_s21 + $0x110] ss:$8 sps:$4 sm:$0xff]  }
  0x1a   : > { %511 = vmatprep.subr.bf16.mxu0 %v752_v20  ;;  %v805_v47 = vld [vmem:[%s874_s21 + $0x104] ss:$8 sps:$4 sm:$0xff]   ;;  %v783_v49 = vld [vmem:[%s874_s21 + $0xe0] ss:$8 sps:$4 sm:$0xff]   ;;  %v785_v50 = vld [vmem:[%s874_s21 + $0xd4] ss:$8 sps:$4 sm:$0xff]  }
  0x1b   : > { %551 = vmatpush1.bf16.msra.mxu1 %v778_v30  ;;  %v221_v48 = vld [vmem:[%s874_s21 + $0x180] sm:$0xff]  ;;  %v789_v54 = vld [vmem:[%s874_s21 + $0xd0] ss:$8 sps:$4 sm:$0xff]   ;;  %v797_v58 = vld [vmem:[%s874_s21 + $0xb4] ss:$8 sps:$4 sm:$0xff]  }
  0x1c   : > { %552 = vmatprep.subr.bf16.mxu1 %v781_v31  ;;  %v808_v51 = vld [vmem:[%s874_s21 + $0x100] ss:$8 sps:$4 sm:$0xff]   ;;  %v724_v52 = vcombine.high %v221_v48, %v221_v48  ;;  %v723_v53 = vcombine.low %v221_v48, %v221_v48  ;;  %v791_v55 = vld [vmem:[%s874_s21 + $0xc4] ss:$8 sps:$4 sm:$0xff]   ;;  %v801_v59 = vld [vmem:[%s874_s21 + $0xb0] ss:$8 sps:$4 sm:$0xff]  }
  0x1d   : > { %512 = vmatpush1.bf16.msra.mxu0 %v754_v23  ;;  %v795_v57 = vld [vmem:[%s874_s21 + $0xc0] ss:$8 sps:$4 sm:$0xff]   ;;  %v803_v60 = vld [vmem:[%s874_s21 + $0xa4] ss:$8 sps:$4 sm:$0xff]   ;;  %v809_v62 = vld [vmem:[%s874_s21 + $0x94] ss:$8 sps:$4 sm:$0xff]  }
  0x1e   : > { %513 = vmatprep.subr.bf16.mxu0 %v755_v24  ;;  %v500_v56 = vsel %vm498_vm1, %v723_v53, 0  ;;  %v807_v61 = vld [vmem:[%s874_s21 + $0xa0] ss:$8 sps:$4 sm:$0xff]   ;;  %v812_v63 = vld [vmem:[%s874_s21 + $0x90] ss:$8 sps:$4 sm:$0xff]   ;;  %vm607_vm7 = vmand %vm605_vm4, %vm606_vm5 }
  0x1f   : > { %553 = vmatpush1.bf16.msra.mxu1 %v784_v34  ;;  %v815_v0 = vld [vmem:[%s874_s21 + $0x84] ss:$8 sps:$4 sm:$0xff]   ;;  %v817_v1 = vld [vmem:[%s874_s21 + $0x80] ss:$8 sps:$4 sm:$0xff]   ;;  %vm608_vm8 = vmor %vm607_vm7, %vm604_vm6 }
  0x20   : > { %554 = vmatprep.subr.bf16.mxu1 %v787_v35  ;;  %v609_v19 = vld [vmem:[%s170_s25] sm:$0xf] }
  0x21   : > { %514 = vmatpush1.bf16.msra.mxu0 %v757_v27 }
  0x22   : > { %515 = vmatprep.subr.bf16.mxu0 %v758_v28 }
  0x23   : > { %555 = vmatpush1.bf16.msra.mxu1 %v790_v38 }
  0x24   : > { %556 = vmatprep.subr.bf16.mxu1 %v793_v39 }
  0x25   : > { %516 = vmatpush1.bf16.msra.mxu0 %v760_v32 }
  0x26   : > { %517 = vmatprep.subr.bf16.mxu0 %v761_v33 }
  0x27   : > { %557 = vmatpush1.bf16.msra.mxu1 %v796_v42 }
  0x28   : > { %558 = vmatprep.subr.bf16.mxu1 %v799_v43 }
  0x29   : > { %518 = vmatpush1.bf16.msra.mxu0 %v765_v36 }
  0x2a   : > { %519 = vmatprep.subr.bf16.mxu0 %v767_v37 }
  0x2b   : > { %559 = vmatpush1.bf16.msra.mxu1 %v802_v46 }
  0x2c   : > { %560 = vmatprep.subr.bf16.mxu1 %v805_v47 }
  0x2d   : > { %520 = vmatpush1.bf16.msra.mxu0 %v771_v40 }
  0x2e   : > { %521 = vmatprep.subr.bf16.mxu0 %v773_v41 }
  0x2f   : > { %561 = vmatpush1.bf16.msra.mxu1 %v808_v51 }
  0x30   : > { %725 = vmatprep.subr.msk.bf16.mxu1 %vm498_vm1, %v724_v52 }
  0x31   : > { %522 = vmatpush2.bf16.msra.mxu0 %v777_v44 }
  0x32   : > { %523 = vmatprep.subr.bf16.mxu0 %v779_v45 }
  0x33   : > { %577 = vmatpush2.bf16.msra.mxu1 %v500_v56 }
  0x35   : > { %524 = vmatpush2.bf16.msra.mxu0 %v783_v49 }
  0x36   : > { %525 = vmatprep.subr.bf16.mxu0 %v785_v50  ;;  %579 = vmatmul.mubr.bf16.vlgmr.msra.gmra.mxu1 %v878_v11 }
  0x39   : > { %526 = vmatpush2.bf16.msra.mxu0 %v789_v54 }
  0x3a   : > { %527 = vmatprep.subr.bf16.mxu0 %v791_v55 }
  0x3d   : > { %528 = vmatpush2.bf16.msra.mxu0 %v795_v57 }
  0x3e   : > { %529 = vmatprep.subr.bf16.mxu0 %v797_v58 }
  0x41   : > { %530 = vmatpush2.bf16.msra.mxu0 %v801_v59 }
  0x42   : > { %531 = vmatprep.subr.bf16.mxu0 %v803_v60 }
  0x45   : > { %532 = vmatpush2.bf16.msra.mxu0 %v807_v61 }
  0x46   : > { %533 = vmatprep.subr.bf16.mxu0 %v809_v62 }
  0x49   : > { %534 = vmatpush2.bf16.msra.mxu0 %v812_v63 }
  0x4a   : > { %535 = vmatprep.subr.bf16.mxu0 %v815_v0 }
  0x4d   : > { %536 = vmatpush2.bf16.msra.mxu0 %v817_v1 }
  0x50   : > { %538 = vmatmul.mubr.bf16.vlgmr.msra.gmra.mxu0 %v881_v12 }
  0x88   : > { %v226_v6 = vpop.permute.xlu0 %225 }
  0xf6   : > { %v580_v2 = vpop.f32.mrf.mxu1 }
  0xf8   : > { %v582_v3 = vpop.f32.mrf.mxu1 }
  0xfa   : > { %v584_v4 = vpop.f32.mrf.mxu1 }
  0xfc   : > { %v585_v5 = vpop.f32.mrf.mxu1 }
 0x110   : > { %v539_v7 = vpop.f32.mrf.mxu0 }
 0x111   : > { %v540_v8 = vadd.f32 %v539_v7, %v226_v6 }
 0x112   : > { %v541_v10 = vpop.f32.mrf.mxu0 }
 0x113   : > { %v581_v11 = vadd.f32 %v580_v2, %v540_v8  ;;  %v542_v13 = vadd.f32 %v541_v10, %v226_v6 }
 0x114   : > { %v543_v14 = vpop.f32.mrf.mxu0 }
 0x115   : > { %v583_v15 = vadd.f32 %v582_v3, %v542_v13  ;;  %818 = vtanh.f32 %v581_v11 }
 0x116   : > { %v544_v16 = vpop.f32.mrf.mxu0 }
 0x117   : > { %820 = vtanh.f32 %v583_v15 }
 0x122   : > { %v819_v12 = vpop.eup %818 }
 0x124   : > { %v821_v17 = vpop.eup %820 }
 0x125   : > { %v727_v18 = vpack.c.bf16 %v821_v17, %v819_v12 }
 0x127   : > { %v600_v20 = vrot.slane %v727_v18, %v869_v9 }
 0x129   : > { %v610_v21 = vsel %vm608_vm8, %v600_v20, %v609_v19 }
 0x12a   : > { %611 = vst [vmem:[%s170_s25] sm:$0xf] %v610_v21 }
 0x12b PF: > { %s13_s12 = sadd.s32 1, %s828_s12  }
 0x12c   : > { %p10_p4 = scmp.ge.s32.totalorder %s13_s12, 4  }
 0x12e   :  { %12 = sbr.rel (!%p10_p4) target bundleno = 1 (0x1), region = 62 }

// kernel: _lambda_.29
= control target key start
LH: loop header
LB: loop body
LE: loop exit
PB: predicated region body
PF: predicated region fallthrough
CT: control target
= control target key end

     0   :  { %s837_s12 = smov 0   ;;  %s930_s0 = inlined_call_operand.vmem [shape: bf16[2,392,256], index: 0, kind: input, shape index: {}]   ;;  %s931_s1 = inlined_call_operand.vmem [shape: bf16[6,392], index: 1, kind: input, shape index: {}]   ;;  %s932_s2 = inlined_call_operand.vmem [shape: f32[6,1], index: 2, kind: input, shape index: {}]   ;;  %s933_s3 = inlined_call_operand.vmem [shape: bf16[2,6,256], index: 3, kind: output, shape index: {}]  }
   0x1 LB: > { %s646_s13 = sadd.s32 4294967295, %s814_s12   ;;  %p650_p0 = scmp.ge.s32.totalorder %s814_s12, 1  ;;  %s814_s12 = sphi %s837_s12, %s13_s12  }
   0x2   : > { %p137_p1 = scmp.lt.s32.totalorder %s814_s12, 3 }
   0x4   : > { %p138_p2 = pnand %p650_p0, %p137_p1 }
   0x5   : > { %p161_p3 = scmp.lt.s32.totalorder (!%p138_p2), %s646_s13, 1 }
   0x6   : > { %141 = sbr.rel (%p138_p2) target bundleno = 297 (0x129), region = 32 }
   0xb   : > { %v848_v0 = vld [vmem:[%s931_s1 + $0x8] sm:$0x77]  ;;  %vm487_vm0 = vcmask 64512   ;;  %v855_v2 = vld [vmem:[%s931_s1] sm:$0x77]  ;;  %v816_v3 = vmov 0  }
   0xc   : > { %v657_v1 = vcombine.high %v848_v0, %v848_v0  ;;  %725 = vset.pattern.permute.xlu0 %v816_v3  ;;  %v223_v4 = vld [vmem:[%s932_s2] sm:$0x3f]  ;;  %s935_s13 = smov (!%p161_p3, %s646_s13), 1  ;;  %v655_v5 = vcombine.high %v855_v2, %v855_v2  ;;  %vm491_vm1 = vcmask 1043456   ;;  %v656_v50 = vcombine.low %v848_v0, %v848_v0 }
   0xd   : > { %226 = vperm.xlu0 %725, %v223_v4   ;;  %s715_s20 = smul.u32 392, %s935_s13  ;;  %v654_v59 = vcombine.low %v855_v2, %v855_v2  ;;  %s713_s24 = sshll.u32 %s935_s13, 3 }
   0xe   : > { %709 = vmatprep.mubr.msk.bf16.mxu1 %vm487_vm0, %v657_v1  ;;  %530 = vmatprep.mubr.bf16.mxu0 %v655_v5  ;;  %s170_s27 = scalar_lea.vmem %s933_s3, %s713_s24 }
   0xf   : > { %s868_s23 = scalar_lea.vmem %s930_s0, %s715_s20 }
  0x10   : > { %v726_v6 = vld [vmem:[%s868_s23 + $0x74] ss:$8 sps:$4 sm:$0xff]   ;;  %v728_v7 = vld [vmem:[%s868_s23 + $0x70] ss:$8 sps:$4 sm:$0xff]   ;;  %v729_v8 = vld [vmem:[%s868_s23 + $0x64] ss:$8 sps:$4 sm:$0xff]  }
  0x11   : > { %498 = vmatprep.subr.bf16.mxu0 %v726_v6  ;;  %v731_v9 = vld [vmem:[%s868_s23 + $0x60] ss:$8 sps:$4 sm:$0xff]   ;;  %v732_v10 = vld [vmem:[%s868_s23 + $0x54] ss:$8 sps:$4 sm:$0xff]   ;;  %v734_v11 = vld [vmem:[%s868_s23 + $0x50] ss:$8 sps:$4 sm:$0xff]  }
  0x12   : > { %499 = vmatpush1.bf16.msra.mxu0 %v728_v7  ;;  %v735_v12 = vld [vmem:[%s868_s23 + $0x44] ss:$8 sps:$4 sm:$0xff]   ;;  %v746_v13 = vld [vmem:[%s868_s23 + $0x174] ss:$8 sps:$4 sm:$0xff]   ;;  %v749_v14 = vld [vmem:[%s868_s23 + $0x170] ss:$8 sps:$4 sm:$0xff]  }
  0x13   : > { %500 = vmatprep.subr.bf16.mxu0 %v729_v8  ;;  %v737_v15 = vld [vmem:[%s868_s23 + $0x40] ss:$8 sps:$4 sm:$0xff]   ;;  %539 = vmatprep.subr.bf16.mxu1 %v746_v13  ;;  %v738_v16 = vld [vmem:[%s868_s23 + $0x34] ss:$8 sps:$4 sm:$0xff]   ;;  %v752_v17 = vld [vmem:[%s868_s23 + $0x164] ss:$8 sps:$4 sm:$0xff]  }
  0x14   : > { %540 = vmatpush1.bf16.msra.mxu1 %v749_v14  ;;  %v755_v18 = vld [vmem:[%s868_s23 + $0x160] ss:$8 sps:$4 sm:$0xff]   ;;  %v740_v19 = vld [vmem:[%s868_s23 + $0x30] ss:$8 sps:$4 sm:$0xff]   ;;  %v741_v20 = vld [vmem:[%s868_s23 + $0x24] ss:$8 sps:$4 sm:$0xff]  }
  0x15   : > { %541 = vmatprep.subr.bf16.mxu1 %v752_v17  ;;  %v758_v21 = vld [vmem:[%s868_s23 + $0x154] ss:$8 sps:$4 sm:$0xff]   ;;  %v761_v22 = vld [vmem:[%s868_s23 + $0x150] ss:$8 sps:$4 sm:$0xff]   ;;  %v764_v23 = vld [vmem:[%s868_s23 + $0x144] ss:$8 sps:$4 sm:$0xff]  }
  0x16   : > { %501 = vmatpush1.bf16.msra.mxu0 %v731_v9  ;;  %v743_v24 = vld [vmem:[%s868_s23 + $0x20] ss:$8 sps:$4 sm:$0xff]   ;;  %v744_v25 = vld [vmem:[%s868_s23 + $0x14] ss:$8 sps:$4 sm:$0xff]   ;;  %v748_v28 = vld [vmem:[%s868_s23 + $0x10] ss:$8 sps:$4 sm:$0xff]  }
  0x17   : > { %502 = vmatprep.subr.bf16.mxu0 %v732_v10  ;;  %v767_v26 = vld [vmem:[%s868_s23 + $0x140] ss:$8 sps:$4 sm:$0xff]   ;;  %v770_v27 = vld [vmem:[%s868_s23 + $0x134] ss:$8 sps:$4 sm:$0xff]   ;;  %v750_v29 = vld [vmem:[%s868_s23 + $0x4] ss:$8 sps:$4 sm:$0xff]  }
  0x18   : > { %542 = vmatpush1.bf16.msra.mxu1 %v755_v18  ;;  %v773_v30 = vld [vmem:[%s868_s23 + $0x130] ss:$8 sps:$4 sm:$0xff]   ;;  %v776_v31 = vld [vmem:[%s868_s23 + $0x124] ss:$8 sps:$4 sm:$0xff]   ;;  %v754_v32 = vld [vmem:[%s868_s23] ss:$8 sps:$4 sm:$0xff]  }
  0x19   : > { %543 = vmatprep.subr.bf16.mxu1 %v758_v21  ;;  %v756_v33 = vld [vmem:[%s868_s23 + $0xf4] ss:$8 sps:$4 sm:$0xff]   ;;  %v779_v34 = vld [vmem:[%s868_s23 + $0x120] ss:$8 sps:$4 sm:$0xff]   ;;  %v760_v36 = vld [vmem:[%s868_s23 + $0xf0] ss:$8 sps:$4 sm:$0xff]  }
  0x1a   : > { %503 = vmatpush1.bf16.msra.mxu0 %v734_v11  ;;  %v782_v35 = vld [vmem:[%s868_s23 + $0x114] ss:$8 sps:$4 sm:$0xff]   ;;  %v762_v37 = vld [vmem:[%s868_s23 + $0xe4] ss:$8 sps:$4 sm:$0xff]   ;;  %v785_v38 = vld [vmem:[%s868_s23 + $0x110] ss:$8 sps:$4 sm:$0xff]  }
  0x1b   : > { %504 = vmatprep.subr.bf16.mxu0 %v735_v12  ;;  %v788_v39 = vld [vmem:[%s868_s23 + $0x104] ss:$8 sps:$4 sm:$0xff]   ;;  %v766_v41 = vld [vmem:[%s868_s23 + $0xe0] ss:$8 sps:$4 sm:$0xff]   ;;  %v768_v42 = vld [vmem:[%s868_s23 + $0xd4] ss:$8 sps:$4 sm:$0xff]  }
  0x1c   : > { %544 = vmatpush1.bf16.msra.mxu1 %v761_v22  ;;  %v222_v40 = vld [vmem:[%s868_s23 + $0x180] sm:$0xff]  ;;  %v772_v46 = vld [vmem:[%s868_s23 + $0xd0] ss:$8 sps:$4 sm:$0xff]   ;;  %v780_v51 = vld [vmem:[%s868_s23 + $0xb4] ss:$8 sps:$4 sm:$0xff]  }
  0x1d   : > { %545 = vmatprep.subr.bf16.mxu1 %v764_v23  ;;  %v791_v43 = vld [vmem:[%s868_s23 + $0x100] ss:$8 sps:$4 sm:$0xff]   ;;  %v707_v44 = vcombine.high %v222_v40, %v222_v40  ;;  %v706_v45 = vcombine.low %v222_v40, %v222_v40  ;;  %v774_v47 = vld [vmem:[%s868_s23 + $0xc4] ss:$8 sps:$4 sm:$0xff]   ;;  %v784_v52 = vld [vmem:[%s868_s23 + $0xb0] ss:$8 sps:$4 sm:$0xff]  }
  0x1e   : > { %505 = vmatpush1.bf16.msra.mxu0 %v737_v15  ;;  %v778_v49 = vld [vmem:[%s868_s23 + $0xc0] ss:$8 sps:$4 sm:$0xff]   ;;  %v786_v53 = vld [vmem:[%s868_s23 + $0xa4] ss:$8 sps:$4 sm:$0xff]   ;;  %v792_v55 = vld [vmem:[%s868_s23 + $0x94] ss:$8 sps:$4 sm:$0xff]  }
  0x1f   : > { %506 = vmatprep.subr.bf16.mxu0 %v738_v16  ;;  %v493_v48 = vsel %vm491_vm1, %v706_v45, 0  ;;  %v790_v54 = vld [vmem:[%s868_s23 + $0xa0] ss:$8 sps:$4 sm:$0xff]   ;;  %v795_v56 = vld [vmem:[%s868_s23 + $0x90] ss:$8 sps:$4 sm:$0xff]  }
  0x20   : > { %546 = vmatpush1.bf16.msra.mxu1 %v767_v26  ;;  %v799_v57 = vld [vmem:[%s868_s23 + $0x84] ss:$8 sps:$4 sm:$0xff]   ;;  %v801_v58 = vld [vmem:[%s868_s23 + $0x80] ss:$8 sps:$4 sm:$0xff]  }
  0x21   : > { %547 = vmatprep.subr.bf16.mxu1 %v770_v27 }
  0x22   : > { %507 = vmatpush1.bf16.msra.mxu0 %v740_v19 }
  0x23   : > { %508 = vmatprep.subr.bf16.mxu0 %v741_v20 }
  0x24   : > { %548 = vmatpush1.bf16.msra.mxu1 %v773_v30 }
  0x25   : > { %549 = vmatprep.subr.bf16.mxu1 %v776_v31 }
  0x26   : > { %509 = vmatpush1.bf16.msra.mxu0 %v743_v24 }
  0x27   : > { %510 = vmatprep.subr.bf16.mxu0 %v744_v25 }
  0x28   : > { %550 = vmatpush1.bf16.msra.mxu1 %v779_v34 }
  0x29   : > { %551 = vmatprep.subr.bf16.mxu1 %v782_v35 }
  0x2a   : > { %511 = vmatpush1.bf16.msra.mxu0 %v748_v28 }
  0x2b   : > { %512 = vmatprep.subr.bf16.mxu0 %v750_v29 }
  0x2c   : > { %552 = vmatpush1.bf16.msra.mxu1 %v785_v38 }
  0x2d   : > { %553 = vmatprep.subr.bf16.mxu1 %v788_v39 }
  0x2e   : > { %513 = vmatpush1.bf16.msra.mxu0 %v754_v32 }
  0x2f   : > { %514 = vmatprep.subr.bf16.mxu0 %v756_v33 }
  0x30   : > { %554 = vmatpush1.bf16.msra.mxu1 %v791_v43 }
  0x31   : > { %708 = vmatprep.subr.msk.bf16.mxu1 %vm491_vm1, %v707_v44 }
  0x32   : > { %515 = vmatpush2.bf16.msra.mxu0 %v760_v36 }
  0x33   : > { %516 = vmatprep.subr.bf16.mxu0 %v762_v37 }
  0x34   : > { %570 = vmatpush2.bf16.msra.mxu1 %v493_v48 }
  0x36   : > { %517 = vmatpush2.bf16.msra.mxu0 %v766_v41 }
  0x37   : > { %518 = vmatprep.subr.bf16.mxu0 %v768_v42  ;;  %572 = vmatmul.mubr.bf16.vlgmr.msra.gmra.mxu1 %v656_v50 }
  0x3a   : > { %519 = vmatpush2.bf16.msra.mxu0 %v772_v46 }
  0x3b   : > { %520 = vmatprep.subr.bf16.mxu0 %v774_v47 }
  0x3e   : > { %521 = vmatpush2.bf16.msra.mxu0 %v778_v49 }
  0x3f   : > { %522 = vmatprep.subr.bf16.mxu0 %v780_v51 }
  0x42   : > { %523 = vmatpush2.bf16.msra.mxu0 %v784_v52 }
  0x43   : > { %524 = vmatprep.subr.bf16.mxu0 %v786_v53 }
  0x46   : > { %525 = vmatpush2.bf16.msra.mxu0 %v790_v54 }
  0x47   : > { %526 = vmatprep.subr.bf16.mxu0 %v792_v55 }
  0x4a   : > { %527 = vmatpush2.bf16.msra.mxu0 %v795_v56 }
  0x4b   : > { %528 = vmatprep.subr.bf16.mxu0 %v799_v57 }
  0x4e   : > { %529 = vmatpush2.bf16.msra.mxu0 %v801_v58 }
  0x51   : > { %531 = vmatmul.mubr.bf16.vlgmr.msra.gmra.mxu0 %v654_v59 }
  0x88   : > { %v227_v0 = vpop.permute.xlu0 %226 }
  0xf7   : > { %v573_v60 = vpop.f32.mrf.mxu1 }
  0xf9   : > { %v575_v61 = vpop.f32.mrf.mxu1 }
  0xfb   : > { %v577_v62 = vpop.f32.mrf.mxu1 }
  0xfd   : > { %v578_v63 = vpop.f32.mrf.mxu1 }
 0x111   : > { %v532_v1 = vpop.f32.mrf.mxu0 }
 0x112   : > { %v533_v3 = vadd.f32 %v532_v1, %v227_v0 }
 0x113   : > { %v534_v4 = vpop.f32.mrf.mxu0 }
 0x114   : > { %v574_v5 = vadd.f32 %v573_v60, %v533_v3  ;;  %v535_v6 = vadd.f32 %v534_v4, %v227_v0 }
 0x115   : > { %v536_v7 = vpop.f32.mrf.mxu0 }
 0x116   : > { %v576_v8 = vadd.f32 %v575_v61, %v535_v6  ;;  %804 = vtanh.f32 %v574_v5 }
 0x117   : > { %v537_v9 = vpop.f32.mrf.mxu0 }
 0x118   : > { %806 = vtanh.f32 %v576_v8 }
 0x123   : > { %v805_v2 = vpop.eup %804 }
 0x125   : > { %v807_v10 = vpop.eup %806 }
 0x126   : > { %v714_v11 = vpack.c.bf16 %v807_v10, %v805_v2 }
 0x128   : > { %590 = vst [vmem:[%s170_s27] sm:$0x77] %v714_v11 }
 0x129 PF: > { %s13_s12 = sadd.s32 1, %s814_s12  }
 0x12a   : > { %p10_p4 = scmp.ge.s32.totalorder %s13_s12, 4  }
 0x12c   :  { %12 = sbr.rel (!%p10_p4) target bundleno = 1 (0x1), region = 62 }

// kernel: _lambda_.22
= control target key start
LH: loop header
LB: loop body
LE: loop exit
PB: predicated region body
PF: predicated region fallthrough
CT: control target
= control target key end

     0   :  { %s547_s12 = smov 0   ;;  %s595_s0 = inlined_call_operand.vmem [shape: bf16[2,147,256], index: 0, kind: input, shape index: {}]   ;;  %s596_s1 = inlined_call_operand.vmem [shape: bf16[8,147], index: 1, kind: input, shape index: {}]   ;;  %s597_s2 = inlined_call_operand.vmem [shape: f32[8,1], index: 2, kind: input, shape index: {}]   ;;  %s598_s3 = inlined_call_operand.vmem [shape: bf16[2,8,256], index: 3, kind: output, shape index: {}]  }
   0x1 LB: > { %s436_s13 = sadd.s32 4294967295, %s523_s12   ;;  %p440_p0 = scmp.ge.s32.totalorder %s523_s12, 1  ;;  %s523_s12 = sphi %s547_s12, %s13_s12  }
   0x2   : > { %p137_p1 = scmp.lt.s32.totalorder %s523_s12, 3 }
   0x4   : > { %p138_p2 = pnand %p440_p0, %p137_p1 }
   0x5   : > { %p161_p3 = scmp.lt.s32.totalorder (!%p138_p2), %s436_s13, 1 }
   0x6   : > { %141 = sbr.rel (%p138_p2) target bundleno = 564 (0x234), region = 32 }
   0xb   : > { %v172_v0 = vld [vmem:[%s596_s1] sm:$0xff]  ;;  %vm299_vm0 = vcmask 154624   ;;  %s600_s13 = smov (!%p161_p3, %s436_s13), 1  ;;  %v525_v3 = vmov 0   ;;  %vm303_vm1 = vcmask 1040384   ;;  %vm304_vm2 = vcmask 1041408  }
   0xc   : > { %v445_v1 = vcombine.high %v172_v0, %v172_v0  ;;  %v192_v2 = vld [vmem:[%s597_s2] sm:$0xff]  ;;  %483 = vset.pattern.permute.xlu0 %v525_v3  ;;  %s472_s18 = smul.u32 152, %s600_s13  ;;  %v526_v18 = vmov 65535   ;;  %v444_v30 = vcombine.low %v172_v0, %v172_v0  ;;  %s470_s22 = sshll.u32 %s600_s13, 3 }
   0xd   : > { %195 = vperm.xlu0 %483, %v192_v2   ;;  %v305_v19 = vsel %vm303_vm1, 4294967295, %v526_v18  ;;  %s170_s25 = scalar_lea.vmem %s598_s3, %s470_s22 }
   0xe   : > { %466 = vmatprep.mubr.msk.bf16.mxu0 %vm299_vm0, %v445_v1  ;;  %s567_s21 = scalar_lea.vmem %s595_s0, %s472_s18  ;;  %v306_v23 = vsel %vm304_vm2, %v305_v19, 0 }
   0xf   : > { %v484_v4 = vld [vmem:[%s567_s21 + $0x74] ss:$8 sps:$4 sm:$0xff]   ;;  %v486_v5 = vld [vmem:[%s567_s21 + $0x70] ss:$8 sps:$4 sm:$0xff]   ;;  %v487_v6 = vld [vmem:[%s567_s21 + $0x64] ss:$8 sps:$4 sm:$0xff]  }
  0x10   : > { %313 = vmatprep.subr.bf16.mxu0 %v484_v4  ;;  %v489_v7 = vld [vmem:[%s567_s21 + $0x60] ss:$8 sps:$4 sm:$0xff]   ;;  %v490_v8 = vld [vmem:[%s567_s21 + $0x54] ss:$8 sps:$4 sm:$0xff]   ;;  %v492_v9 = vld [vmem:[%s567_s21 + $0x50] ss:$8 sps:$4 sm:$0xff]  }
  0x11   : > { %314 = vmatpush1.bf16.msra.mxu0 %v486_v5  ;;  %v493_v10 = vld [vmem:[%s567_s21 + $0x44] ss:$8 sps:$4 sm:$0xff]   ;;  %v495_v11 = vld [vmem:[%s567_s21 + $0x40] ss:$8 sps:$4 sm:$0xff]   ;;  %v496_v12 = vld [vmem:[%s567_s21 + $0x34] ss:$8 sps:$4 sm:$0xff]  }
  0x12   : > { %315 = vmatprep.subr.bf16.mxu0 %v487_v6  ;;  %v498_v13 = vld [vmem:[%s567_s21 + $0x30] ss:$8 sps:$4 sm:$0xff]   ;;  %v499_v14 = vld [vmem:[%s567_s21 + $0x24] ss:$8 sps:$4 sm:$0xff]   ;;  %v501_v15 = vld [vmem:[%s567_s21 + $0x20] ss:$8 sps:$4 sm:$0xff]  }
  0x13   : > { %v502_v16 = vld [vmem:[%s567_s21 + $0x14] ss:$8 sps:$4 sm:$0xff]   ;;  %v504_v20 = vld [vmem:[%s567_s21 + $0x10] ss:$8 sps:$4 sm:$0xff]   ;;  %v505_v21 = vld [vmem:[%s567_s21 + $0x4] ss:$8 sps:$4 sm:$0xff]  }
  0x14   : > { %v191_v17 = vld [vmem:[%s567_s21 + $0x90] sm:$0x33]  ;;  %v507_v24 = vld [vmem:[%s567_s21] ss:$8 sps:$4 sm:$0xff]   ;;  %v510_v28 = vld [vmem:[%s567_s21 + $0x84] ss:$8 sps:$4 sm:$0xff]  }
  0x15   : > { %316 = vmatpush1.bf16.msra.mxu0 %v489_v7  ;;  %v465_v22 = vcombine.high %v191_v17, %v191_v17  ;;  %v464_v25 = vcombine.low %v191_v17, %v191_v17  ;;  %v512_v29 = vld [vmem:[%s567_s21 + $0x80] ss:$8 sps:$4 sm:$0xff]  }
  0x16   : > { %317 = vmatprep.subr.bf16.mxu0 %v490_v8 }
  0x17   : > { %v311_v26 = vand.u32 %v465_v22, %v306_v23  ;;  %v308_v27 = vand.u32 %v464_v25, %v306_v23 }
  0x19   : > { %318 = vmatpush1.bf16.msra.mxu0 %v492_v9 }
  0x1a   : > { %319 = vmatprep.subr.bf16.mxu0 %v493_v10 }
  0x1d   : > { %320 = vmatpush1.bf16.msra.mxu0 %v495_v11 }
  0x1e   : > { %321 = vmatprep.subr.bf16.mxu0 %v496_v12 }
  0x21   : > { %322 = vmatpush1.bf16.msra.mxu0 %v498_v13 }
  0x22   : > { %323 = vmatprep.subr.bf16.mxu0 %v499_v14 }
  0x25   : > { %324 = vmatpush1.bf16.msra.mxu0 %v501_v15 }
  0x26   : > { %325 = vmatprep.subr.bf16.mxu0 %v502_v16 }
  0x29   : > { %326 = vmatpush1.bf16.msra.mxu0 %v504_v20 }
  0x2a   : > { %327 = vmatprep.subr.bf16.mxu0 %v505_v21 }
  0x2d   : > { %328 = vmatpush1.bf16.msra.mxu0 %v507_v24 }
  0x2e   : > { %341 = vmatprep.subr.bf16.mxu0 %v311_v26 }
  0x31   : > { %342 = vmatpush2.bf16.msra.mxu0 %v308_v27 }
  0x32   : > { %343 = vmatprep.subr.bf16.mxu0 %v510_v28 }
  0x35   : > { %344 = vmatpush2.bf16.msra.mxu0 %v512_v29 }
  0x38   : > { %346 = vmatmul.mubr.bf16.vlgmr.msra.gmra.mxu0 %v444_v30 }
  0x88   : > { %v196_v31 = vpop.permute.xlu0 %195 }
  0xf8   : > { %v347_v32 = vpop.f32.mrf.mxu0 }
  0xf9   : > { %v348_v34 = vadd.f32 %v347_v32, %v196_v31 }
  0xfa   : > { %v349_v33 = vpop.f32.mrf.mxu0 }
  0xfb   : > { %v350_v35 = vadd.f32 %v349_v33, %v196_v31 }
  0xfc   : > { %v351_v36 = vpop.f32.mrf.mxu0 }
  0xfd   : > { %v354_v37 = vadd.f32 %v350_v35, %v348_v34 }
  0xfe   : > { %v352_v38 = vpop.f32.mrf.mxu0 }
  0xff   : > { %355 = vadd.xlane.f32.xlu0 %v354_v37 }
 0x188   : > { %v356_v39 = vpop.xlane.xlu0 %355 }
 0x189   : > { %v357_v40 = vmul.f32 0.00390625, %v356_v39 }
 0x18b   : > { %v358_v41 = vsub.f32 %v348_v34, %v357_v40  ;;  %v359_v42 = vsub.f32 %v350_v35, %v357_v40 }
 0x18d   : > { %v360_v43 = vmul.f32 %v358_v41, %v358_v41  ;;  %v361_v44 = vmul.f32 %v359_v42, %v359_v42 }
 0x18f   : > { %v362_v45 = vadd.f32 %v361_v44, %v360_v43 }
 0x191   : > { %363 = vadd.xlane.f32.xlu1 %v362_v45 }
 0x21a   : > { %v364_v46 = vpop.xlane.xlu1 %363 }
 0x21b   : > { %v365_v47 = vmul.f32 0.00390625, %v364_v46 }
 0x21d   : > { %v366_v48 = vadd.f32 1e-05, %v365_v47 }
 0x21f   : > { %515 = vrsqrt.f32 %v366_v48 }
 0x22c   : > { %v516_v49 = vpop.eup %515 }
 0x22d   : > { %v368_v50 = vmul.f32 %v516_v49, %v358_v41  ;;  %v369_v51 = vmul.f32 %v516_v49, %v359_v42 }
 0x22f   : > { %v370_v52 = vmax.f32 %v368_v50, 0.0  ;;  %v371_v53 = vmax.f32 %v369_v51, 0.0 }
 0x231   : > { %v471_v54 = vpack.c.bf16 %v371_v53, %v370_v52 }
 0x233   : > { %380 = vst [vmem:[%s170_s25] sm:$0xff] %v471_v54 }
 0x234 PF: > { %s13_s12 = sadd.s32 1, %s523_s12  }
 0x235   : > { %p10_p4 = scmp.ge.s32.totalorder %s13_s12, 4  }
 0x237   :  { %12 = sbr.rel (!%p10_p4) target bundleno = 1 (0x1), region = 62 }

</bundles_post_ra>
